<compile_context>
chip_gen: v7x
topology: tpu7x:2x2x1
jax: 0.10.0
libtpu: 0.0.40
codegen_flags: <defaults>
</compile_context>

<pallas_src>
import math
import functools

import jax
import jax.numpy as jnp
from jax.experimental import pallas as pl
from jax.experimental.pallas import tpu as pltpu

NEG_INF = -1e9
LN_EPS = 1e-5
PAD_IDX = 1  # TODO(synk): create_mask() is not given; assume standard PAD_IDX=1 convention.
VMEM_LIMIT = 48 * 1024 * 1024  # leave headroom under v7x's 64 MiB VMEM (fine on v5e/v6e)

# Tile targets (multiples of (8, 128); safely under VMEM on all generations, incl. v7x).
TM = 256
TN = 512
TK = 512
TM_LN = 512


def _round_up(x, m):
    return ((x + m - 1) // m) * m


def _tiling(dim, target):
    """Return (tile, padded_dim, num_tiles). Full-dim block if dim <= target."""
    if dim <= target:
        return dim, dim, 1
    padded = _round_up(dim, target)
    return target, padded, padded // target


# ----------------------------- tiled linear -----------------------------

def _matmul_kernel(x_ref, w_ref, b_ref, o_ref, acc_ref, *, activation):
    @pl.when(pl.program_id(2) == 0)
    def _():
        acc_ref[...] = jnp.zeros_like(acc_ref)

    acc_ref[...] += jnp.dot(x_ref[...], w_ref[...],
                            preferred_element_type=jnp.float32)

    @pl.when(pl.program_id(2) == pl.num_programs(2) - 1)
    def _():
        y = acc_ref[...] + b_ref[...]
        if activation == "relu":
            y = jnp.maximum(y, 0.0)
        o_ref[...] = y.astype(o_ref.dtype)


def linear(x, w, b, activation=None):
    """y = act(x @ w + b), w stored (in, out). Tiled, pipelined, bf16 MXU inputs."""
    lead = x.shape[:-1]
    K = x.shape[-1]
    N = w.shape[-1]
    x2 = x.reshape(-1, K)
    M = x2.shape[0]

    tm, Mp, gm = _tiling(M, TM)
    tn, Np, gn = _tiling(N, TN)
    tk, Kp, gk = _tiling(K, TK)

    xb = x2.astype(jnp.bfloat16)
    wb = w.astype(jnp.bfloat16)
    bb = b.reshape(1, N).astype(jnp.float32)
    if Mp != M or Kp != K:
        xb = jnp.pad(xb, ((0, Mp - M), (0, Kp - K)))
    if Kp != K or Np != N:
        wb = jnp.pad(wb, ((0, Kp - K), (0, Np - N)))
    if Np != N:
        bb = jnp.pad(bb, ((0, 0), (0, Np - N)))

    out = pl.pallas_call(
        functools.partial(_matmul_kernel, activation=activation),
        grid=(gm, gn, gk),
        in_specs=[
            pl.BlockSpec((tm, tk), lambda i, j, k: (i, k)),
            pl.BlockSpec((tk, tn), lambda i, j, k: (k, j)),
            pl.BlockSpec((1, tn), lambda i, j, k: (0, j)),
        ],
        out_specs=pl.BlockSpec((tm, tn), lambda i, j, k: (i, j)),
        out_shape=jax.ShapeDtypeStruct((Mp, Np), jnp.float32),
        scratch_shapes=[pltpu.VMEM((tm, tn), jnp.float32)],
        compiler_params=pltpu.CompilerParams(
            dimension_semantics=("parallel", "parallel", "arbitrary"),
            vmem_limit_bytes=VMEM_LIMIT),
        cost_estimate=pl.CostEstimate(
            flops=2 * Mp * Np * Kp,
            transcendentals=0,
            bytes_accessed=Mp * Kp * 2 + Kp * Np * 2 + Mp * Np * 4),
    )(xb, wb, bb)

    if Mp != M or Np != N:
        out = out[:M, :N]
    return out.reshape(*lead, N)


# ----------------------------- fused FFN -----------------------------

def _ffn_kernel(x_ref, w1_ref, b1_ref, w2_ref, b2_ref, o_ref):
    h = jnp.dot(x_ref[...], w1_ref[...], preferred_element_type=jnp.float32) + b1_ref[...]
    h = jnp.maximum(h, 0.0).astype(w2_ref.dtype)
    y = jnp.dot(h, w2_ref[...], preferred_element_type=jnp.float32) + b2_ref[...]
    o_ref[...] = y.astype(o_ref.dtype)


def ffn(x, w1, b1, w2, b2):
    """Fused linear+ReLU+linear (one kernel launch per row-tile)."""
    lead = x.shape[:-1]
    E = x.shape[-1]
    F = w1.shape[-1]
    x2 = x.reshape(-1, E)
    M = x2.shape[0]
    tm, Mp, gm = _tiling(M, TM)

    # Rough per-step VMEM: bf16 weights (resident) + double-buffered bf16 x / f32 out
    # tiles + f32 intermediate.
    vmem_est = (2 * (E * F + F * E) + 4 * (F + E)
                + 2 * (tm * E * 2 + tm * E * 4) + 4 * tm * F)
    if vmem_est > 16 * 1024 * 1024:
        # TODO(synk): very large dim_feedforward — fall back to two tiled linear kernels.
        return linear(linear(x, w1, b1, activation="relu"), w2, b2)

    if Mp != M:
        x2 = jnp.pad(x2, ((0, Mp - M), (0, 0)))

    out = pl.pallas_call(
        _ffn_kernel,
        grid=(gm,),
        in_specs=[
            pl.BlockSpec((tm, E), lambda i: (i, 0)),
            pl.BlockSpec((E, F), lambda i: (0, 0)),
            pl.BlockSpec((1, F), lambda i: (0, 0)),
            pl.BlockSpec((F, E), lambda i: (0, 0)),
            pl.BlockSpec((1, E), lambda i: (0, 0)),
        ],
        out_specs=pl.BlockSpec((tm, E), lambda i: (i, 0)),
        out_shape=jax.ShapeDtypeStruct((Mp, E), jnp.float32),
        compiler_params=pltpu.CompilerParams(
            dimension_semantics=("parallel",),
            vmem_limit_bytes=VMEM_LIMIT),
    )(x2.astype(jnp.bfloat16), w1.astype(jnp.bfloat16),
      b1.reshape(1, F).astype(jnp.float32), w2.astype(jnp.bfloat16),
      b2.reshape(1, E).astype(jnp.float32))
    return out[:M].reshape(*lead, E)


# ----------------------------- fused multi-head attention -----------------------------

def _attn_kernel(q_ref, k_ref, v_ref, bias_ref, o_ref, *, nhead, scale):
    # q_ref: (1, Tq, E) bf16; k_ref/v_ref: (1, Tk, E) bf16; bias_ref: (1, Tq, Tk) f32.
    E = q_ref.shape[2]
    Dh = E // nhead
    q = q_ref[0] * scale          # fold scale into Q (bf16, (Tq, E))
    k = k_ref[0]
    v = v_ref[0]
    bias = bias_ref[0]            # (Tq, Tk) f32, shared across heads
    contract_last = (((1,), (1,)), ((), ()))
    outs = []
    for h in range(nhead):
        lo, hi = h * Dh, (h + 1) * Dh
        qh, kh, vh = q[:, lo:hi], k[:, lo:hi], v[:, lo:hi]
        s = jax.lax.dot_general(qh, kh, contract_last,
                                preferred_element_type=jnp.float32) + bias
        m = jnp.max(s, axis=-1, keepdims=True)
        p = jnp.exp(s - m)
        denom = jnp.sum(p, axis=-1, keepdims=True)
        o = jnp.dot(p.astype(vh.dtype), vh, preferred_element_type=jnp.float32)
        o = o * pl.reciprocal(denom, approx=True)   # EUP slot, after the PV matmul
        outs.append(o)
    # Lane-dense (Tq, E) output slab, heads already in their final column positions.
    o_ref[0] = jnp.concatenate(outs, axis=-1).astype(o_ref.dtype)


def attention_core(q, k, v, bias, nhead):
    """q: (B, Tq, E), k/v: (B, Tk, E), bias: (B, Tq, Tk) additive f32 mask."""
    B, Tq, E = q.shape
    Tk = k.shape[1]
    Dh = E // nhead
    scale = 1.0 / math.sqrt(Dh)
    return pl.pallas_call(
        functools.partial(_attn_kernel, nhead=nhead, scale=scale),
        grid=(B,),
        in_specs=[
            pl.BlockSpec((1, Tq, E), lambda b: (b, 0, 0)),
            pl.BlockSpec((1, Tk, E), lambda b: (b, 0, 0)),
            pl.BlockSpec((1, Tk, E), lambda b: (b, 0, 0)),
            pl.BlockSpec((1, Tq, Tk), lambda b: (b, 0, 0)),
        ],
        out_specs=pl.BlockSpec((1, Tq, E), lambda b: (b, 0, 0)),
        out_shape=jax.ShapeDtypeStruct((B, Tq, E), jnp.float32),
        compiler_params=pltpu.CompilerParams(
            dimension_semantics=("parallel",),
            vmem_limit_bytes=VMEM_LIMIT),
    )(q.astype(jnp.bfloat16), k.astype(jnp.bfloat16),
      v.astype(jnp.bfloat16), bias.astype(jnp.float32))


def self_attention(p, x, bias, nhead):
    # x: (T, B, E); fused QKV projection (single matmul over (E, 3E)).
    T, B, E = x.shape
    qkv = linear(x, p["w_qkv"], p["b_qkv"])        # (T, B, 3E)
    qkv = qkv.transpose(1, 0, 2)                   # (B, T, 3E)
    q, k, v = jnp.split(qkv, 3, axis=-1)
    o = attention_core(q, k, v, bias, nhead)       # (B, T, E)
    return linear(o.transpose(1, 0, 2), p["wo"], p["bo"])


def cross_attention(p, x, memory, bias, nhead):
    # x: (T, B, E); memory: (S, B, E); fused KV projection (single (E, 2E) matmul).
    q = linear(x, p["wq"], p["bq"]).transpose(1, 0, 2)            # (B, T, E)
    kv = linear(memory, p["w_kv"], p["b_kv"]).transpose(1, 0, 2)  # (B, S, 2E)
    k, v = jnp.split(kv, 2, axis=-1)
    o = attention_core(q, k, v, bias, nhead)                      # (B, T, E)
    return linear(o.transpose(1, 0, 2), p["wo"], p["bo"])


# ----------------------------- LayerNorm kernels -----------------------------

def _ln_kernel(x_ref, g_ref, b_ref, o_ref):
    h = x_ref[...].astype(jnp.float32)
    mean = jnp.mean(h, axis=-1, keepdims=True)
    var = jnp.mean((h - mean) ** 2, axis=-1, keepdims=True)
    hn = (h - mean) * jax.lax.rsqrt(var + LN_EPS)
    o_ref[...] = (hn * g_ref[...] + b_ref[...]).astype(o_ref.dtype)


def _add_ln_kernel(x_ref, y_ref, g_ref, b_ref, o_ref):
    h = x_ref[...].astype(jnp.float32) + y_ref[...].astype(jnp.float32)
    mean = jnp.mean(h, axis=-1, keepdims=True)
    var = jnp.mean((h - mean) ** 2, axis=-1, keepdims=True)
    hn = (h - mean) * jax.lax.rsqrt(var + LN_EPS)
    o_ref[...] = (hn * g_ref[...] + b_ref[...]).astype(o_ref.dtype)


def _ln_call(kernel, xs, gamma, beta, E, M):
    tm, Mp, gm = _tiling(M, TM_LN)
    xs = [jnp.pad(x, ((0, Mp - M), (0, 0))) if Mp != M else x for x in xs]
    row_spec = pl.BlockSpec((tm, E), lambda i: (i, 0))
    vec_spec = pl.BlockSpec((1, E), lambda i: (0, 0))
    out = pl.pallas_call(
        kernel,
        grid=(gm,),
        in_specs=[row_spec] * len(xs) + [vec_spec, vec_spec],
        out_specs=row_spec,
        out_shape=jax.ShapeDtypeStruct((Mp, E), jnp.float32),
        compiler_params=pltpu.CompilerParams(
            dimension_semantics=("parallel",),
            vmem_limit_bytes=VMEM_LIMIT),
    )(*xs, gamma.reshape(1, E).astype(jnp.float32),
      beta.reshape(1, E).astype(jnp.float32))
    return out[:M]


def layer_norm(x, gamma, beta):
    lead = x.shape[:-1]
    E = x.shape[-1]
    x2 = x.reshape(-1, E)
    out = _ln_call(_ln_kernel, [x2], gamma, beta, E, x2.shape[0])
    return out.reshape(*lead, E)


def add_layer_norm(x, y, gamma, beta):
    """LayerNorm(x + y) over the last axis, fused residual add + LN."""
    lead = x.shape[:-1]
    E = x.shape[-1]
    x2 = x.reshape(-1, E)
    y2 = y.reshape(-1, E)
    out = _ln_call(_add_ln_kernel, [x2, y2], gamma, beta, E, x2.shape[0])
    return out.reshape(*lead, E)


# ----------------------------- Model pieces -----------------------------

def make_bias(B, Tq, Tk, causal, key_padding_mask):
    """Additive attention bias (B, Tq, Tk): causal mask + key padding (no per-head copy)."""
    if causal:
        bias = jnp.where(jnp.arange(Tk)[None, :] > jnp.arange(Tq)[:, None], NEG_INF, 0.0)
    else:
        bias = jnp.zeros((Tq, Tk), jnp.float32)
    bias = jnp.broadcast_to(bias[None, :, :], (B, Tq, Tk))
    if key_padding_mask is not None:
        bias = bias + jnp.where(key_padding_mask[:, None, :], NEG_INF, 0.0)
    return bias


def encoder_layer(p, x, src_bias, nhead):
    sa = self_attention(p["self_attn"], x, src_bias, nhead)
    x = add_layer_norm(x, sa, p["ln1_g"], p["ln1_b"])
    ff = ffn(x, p["w1"], p["b1"], p["w2"], p["b2"])
    x = add_layer_norm(x, ff, p["ln2_g"], p["ln2_b"])
    return x


def decoder_layer(p, x, memory, tgt_bias, mem_bias, nhead):
    sa = self_attention(p["self_attn"], x, tgt_bias, nhead)
    x = add_layer_norm(x, sa, p["ln1_g"], p["ln1_b"])
    ca = cross_attention(p["cross_attn"], x, memory, mem_bias, nhead)
    x = add_layer_norm(x, ca, p["ln2_g"], p["ln2_b"])
    ff = ffn(x, p["w1"], p["b1"], p["w2"], p["b2"])
    x = add_layer_norm(x, ff, p["ln3_g"], p["ln3_b"])
    return x


def make_pos_embedding(max_len, emb_size):
    inv = jnp.exp(-jnp.arange(0, emb_size, 2, dtype=jnp.float32)
                  * math.log(10000.0) / emb_size)
    pos = jnp.arange(max_len, dtype=jnp.float32).reshape(max_len, 1)
    pe = jnp.zeros((max_len, emb_size), jnp.float32)
    pe = pe.at[:, 0::2].set(jnp.sin(pos * inv))
    pe = pe.at[:, 1::2].set(jnp.cos(pos * inv))
    return pe[:, None, :]  # (max_len, 1, emb_size)


def positional_embedding(p, tokens):
    emb = p["table"][tokens] * math.sqrt(p["table"].shape[1])   # (S, B, E)
    return emb + p["pos"][: tokens.shape[0]]                    # dropout = identity (eval)


def transformer_translator_forward(params, src_indices, tgt_indices, nhead):
    tgt_input = tgt_indices[:-1, :]
    S, B = src_indices.shape
    T = tgt_input.shape[0]
    src_kpm = (src_indices == PAD_IDX).T  # (B, S)
    tgt_kpm = (tgt_input == PAD_IDX).T    # (B, T)

    src_emb = positional_embedding(params["src_tok_emb"], src_indices)
    tgt_emb = positional_embedding(params["tgt_tok_emb"], tgt_input)

    src_bias = make_bias(B, S, S, causal=False, key_padding_mask=src_kpm)
    tgt_bias = make_bias(B, T, T, causal=True, key_padding_mask=tgt_kpm)
    mem_bias = make_bias(B, T, S, causal=False, key_padding_mask=src_kpm)

    x = src_emb
    for lp in params["encoder_layers"]:
        x = encoder_layer(lp, x, src_bias, nhead)
    memory = layer_norm(x, params["enc_norm_g"], params["enc_norm_b"])

    y = tgt_emb
    for lp in params["decoder_layers"]:
        y = decoder_layer(lp, y, memory, tgt_bias, mem_bias, nhead)
    y = layer_norm(y, params["dec_norm_g"], params["dec_norm_b"])

    return linear(y, params["gen_w"], params["gen_b"])  # (T, B, tgt_vocab)


# ----------------------------- Parameter init -----------------------------

def xavier(key, shape):
    fan_in, fan_out = shape
    bound = math.sqrt(6.0 / (fan_in + fan_out))
    return jax.random.uniform(key, shape, jnp.float32, -bound, bound)


def init_self_attn_params(key, E):
    ks = jax.random.split(key, 2)
    return {"w_qkv": xavier(ks[0], (E, 3 * E)), "b_qkv": jnp.zeros((3 * E,), jnp.float32),
            "wo": xavier(ks[1], (E, E)), "bo": jnp.zeros((E,), jnp.float32)}


def init_cross_attn_params(key, E):
    ks = jax.random.split(key, 3)
    return {"wq": xavier(ks[0], (E, E)), "bq": jnp.zeros((E,), jnp.float32),
            "w_kv": xavier(ks[1], (E, 2 * E)), "b_kv": jnp.zeros((2 * E,), jnp.float32),
            "wo": xavier(ks[2], (E, E)), "bo": jnp.zeros((E,), jnp.float32)}


def init_encoder_layer(key, emb_size, ff):
    ks = jax.random.split(key, 3)
    return {"self_attn": init_self_attn_params(ks[0], emb_size),
            "w1": xavier(ks[1], (emb_size, ff)), "b1": jnp.zeros((ff,), jnp.float32),
            "w2": xavier(ks[2], (ff, emb_size)), "b2": jnp.zeros((emb_size,), jnp.float32),
            "ln1_g": jnp.ones((emb_size,), jnp.float32), "ln1_b": jnp.zeros((emb_size,), jnp.float32),
            "ln2_g": jnp.ones((emb_size,), jnp.float32), "ln2_b": jnp.zeros((emb_size,), jnp.float32)}


def init_decoder_layer(key, emb_size, ff):
    ks = jax.random.split(key, 4)
    p = {"self_attn": init_self_attn_params(ks[0], emb_size),
         "cross_attn": init_cross_attn_params(ks[1], emb_size),
         "w1": xavier(ks[2], (emb_size, ff)), "b1": jnp.zeros((ff,), jnp.float32),
         "w2": xavier(ks[3], (ff, emb_size)), "b2": jnp.zeros((emb_size,), jnp.float32)}
    for n in ("ln1", "ln2", "ln3"):
        p[n + "_g"] = jnp.ones((emb_size,), jnp.float32)
        p[n + "_b"] = jnp.zeros((emb_size,), jnp.float32)
    return p


def init_params(key, num_enc, num_dec, max_len, emb_size, src_vocab, tgt_vocab, ff):
    keys = jax.random.split(key, num_enc + num_dec + 3)
    pos = make_pos_embedding(max_len, emb_size)
    return {
        "src_tok_emb": {"table": xavier(keys[0], (src_vocab, emb_size)), "pos": pos},
        "tgt_tok_emb": {"table": xavier(keys[1], (tgt_vocab, emb_size)), "pos": pos},
        "encoder_layers": [init_encoder_layer(keys[2 + i], emb_size, ff)
                           for i in range(num_enc)],
        "decoder_layers": [init_decoder_layer(keys[2 + num_enc + i], emb_size, ff)
                           for i in range(num_dec)],
        "enc_norm_g": jnp.ones((emb_size,), jnp.float32),
        "enc_norm_b": jnp.zeros((emb_size,), jnp.float32),
        "dec_norm_g": jnp.ones((emb_size,), jnp.float32),
        "dec_norm_b": jnp.zeros((emb_size,), jnp.float32),
        "gen_w": xavier(keys[2 + num_enc + num_dec], (emb_size, tgt_vocab)),
        "gen_b": jnp.zeros((tgt_vocab,), jnp.float32),
    }


# ----------------------------- Demo -----------------------------

if __name__ == "__main__":
    num_encoder_layers = 2
    num_decoder_layers = 2
    max_len = 16
    emb_size = 32
    nhead = 4
    src_vocab_size = 50
    tgt_vocab_size = 60
    dim_feedforward = 64
    S, T, B = 8, 9, 2  # src len, tgt len (before shift), batch

    key = jax.random.PRNGKey(0)
    pkey, skey, tkey = jax.random.split(key, 3)
    params = init_params(pkey, num_encoder_layers, num_decoder_layers, max_len,
                         emb_size, src_vocab_size, tgt_vocab_size, dim_feedforward)

    src_indices = jax.random.randint(skey, (S, B), 2, src_vocab_size, dtype=jnp.int32)
    tgt_indices = jax.random.randint(tkey, (T, B), 2, tgt_vocab_size, dtype=jnp.int32)
    # inject some PAD tokens so the padding masks are exercised
    src_indices = src_indices.at[-1, 0].set(PAD_IDX)
    tgt_indices = tgt_indices.at[-1, 1].set(PAD_IDX)

    forward = jax.jit(transformer_translator_forward, static_argnames=("nhead",))
    logits = forward(params, src_indices, tgt_indices, nhead=nhead)
    logits = jax.block_until_ready(logits)

    assert logits.shape == (T - 1, B, tgt_vocab_size), logits.shape
    assert bool(jnp.all(jnp.isfinite(logits)))
    print("KERNEL_OK")
</pallas_src>

<mosaic_0001>
module attributes {stable_mosaic.version = 11 : i64} {
  func.func @_matmul_kernel(%arg0: i32, %arg1: i32, %arg2: i32, %arg3: memref<16x32xbf16, #tpu.memory_space<vmem>>, %arg4: memref<32x96xbf16, #tpu.memory_space<vmem>>, %arg5: memref<1x96xf32, #tpu.memory_space<vmem>>, %arg6: memref<16x96xf32, #tpu.memory_space<vmem>>, %arg7: memref<16x96xf32, #tpu.memory_space<vmem>>) attributes {dimension_semantics = [#tpu.dimension_semantics<parallel>, #tpu.dimension_semantics<parallel>, #tpu.dimension_semantics<arbitrary>], iteration_bounds = array<i64: 1, 1, 1>, scalar_prefetch = 0 : i64, scratch_operands = 1 : i64, tpu.core_type = #tpu.core_type<tc>, window_params = [{transform_indices = @transform_0, window_bounds = array<i64: 16, 32>}, {transform_indices = @transform_1, window_bounds = array<i64: 32, 96>}, {transform_indices = @transform_2, window_bounds = array<i64: 1, 96>}, {transform_indices = @transform_3, window_bounds = array<i64: 16, 96>}]} {
    %c0_i32 = arith.constant 0 : i32
    %0 = arith.cmpi eq, %arg2, %c0_i32 : i32
    %1 = arith.extui %0 : i1 to i32
    %c0_i32_0 = arith.constant 0 : i32
    %2 = arith.cmpi ne, %1, %c0_i32_0 : i32
    scf.if %2 {
      %cst_10 = arith.constant 0.000000e+00 : f32
      %12 = vector.broadcast %cst_10 : f32 to vector<16x96xf32>
      %c0_11 = arith.constant 0 : index
      %c0_12 = arith.constant 0 : index
      %13 = vector.load %arg7[%c0_11, %c0_12] : memref<16x96xf32, #tpu.memory_space<vmem>>, vector<16x96xf32>
      tpu.vector_store %arg7[%c0_11, %c0_12], %12 {strides = array<i32>} : memref<16x96xf32, #tpu.memory_space<vmem>>, vector<16x96xf32>,
    } else {
    }
    %c0 = arith.constant 0 : index
    %c0_1 = arith.constant 0 : index
    %3 = vector.load %arg7[%c0, %c0_1] : memref<16x96xf32, #tpu.memory_space<vmem>>, vector<16x96xf32>
    %c0_2 = arith.constant 0 : index
    %c0_3 = arith.constant 0 : index
    %4 = vector.load %arg3[%c0_2, %c0_3] : memref<16x32xbf16, #tpu.memory_space<vmem>>, vector<16x32xbf16>
    %c0_4 = arith.constant 0 : index
    %c0_5 = arith.constant 0 : index
    %5 = vector.load %arg4[%c0_4, %c0_5] : memref<32x96xbf16, #tpu.memory_space<vmem>>, vector<32x96xbf16>
    %cst = arith.constant dense<0.000000e+00> : vector<16x96xf32>
    %6 = tpu.matmul %4, %5, %cst {dimension_numbers = #tpu.dot_dimension_numbers<[1], [0], [0], [1], [0, 0, 1, 1], [], []>} : vector<16x32xbf16>, vector<32x96xbf16>, vector<16x96xf32> -> vector<16x96xf32>
    %7 = arith.addf %3, %6 : vector<16x96xf32>
    %c0_6 = arith.constant 0 : index
    %c0_7 = arith.constant 0 : index
    %8 = vector.load %arg7[%c0_6, %c0_7] : memref<16x96xf32, #tpu.memory_space<vmem>>, vector<16x96xf32>
    tpu.vector_store %arg7[%c0_6, %c0_7], %7 {strides = array<i32>} : memref<16x96xf32, #tpu.memory_space<vmem>>, vector<16x96xf32>,
    %c0_i32_8 = arith.constant 0 : i32
    %9 = arith.cmpi eq, %arg2, %c0_i32_8 : i32
    %10 = arith.extui %9 : i1 to i32
    %c0_i32_9 = arith.constant 0 : i32
    %11 = arith.cmpi ne, %10, %c0_i32_9 : i32
    scf.if %11 {
      %c0_10 = arith.constant 0 : index
      %c0_11 = arith.constant 0 : index
      %12 = vector.load %arg7[%c0_10, %c0_11] : memref<16x96xf32, #tpu.memory_space<vmem>>, vector<16x96xf32>
      %c0_12 = arith.constant 0 : index
      %c0_13 = arith.constant 0 : index
      %13 = vector.load %arg5[%c0_12, %c0_13] : memref<1x96xf32, #tpu.memory_space<vmem>>, vector<1x96xf32>
      %14 = vector.broadcast %13 : vector<1x96xf32> to vector<16x96xf32>
      %15 = arith.addf %12, %14 : vector<16x96xf32>
      %c0_14 = arith.constant 0 : index
      %c0_15 = arith.constant 0 : index
      %16 = vector.load %arg6[%c0_14, %c0_15] : memref<16x96xf32, #tpu.memory_space<vmem>>, vector<16x96xf32>
      tpu.vector_store %arg6[%c0_14, %c0_15], %15 {strides = array<i32>} : memref<16x96xf32, #tpu.memory_space<vmem>>, vector<16x96xf32>,
    } else {
    }
    return
  }
  func.func @transform_0(%arg0: i32, %arg1: i32, %arg2: i32) -> (i32, i32) {
    %c0_i32 = arith.constant 0 : i32
    return %arg0, %arg2 : i32, i32
  }
  func.func @transform_1(%arg0: i32, %arg1: i32, %arg2: i32) -> (i32, i32) {
    %c0_i32 = arith.constant 0 : i32
    return %arg2, %arg1 : i32, i32
  }
  func.func @transform_2(%arg0: i32, %arg1: i32, %arg2: i32) -> (i32, i32) {
    %c0_i32 = arith.constant 0 : i32
    %c0_i32_0 = arith.constant 0 : i32
    return %c0_i32, %arg1 : i32, i32
  }
  func.func @transform_3(%arg0: i32, %arg1: i32, %arg2: i32) -> (i32, i32) {
    %c0_i32 = arith.constant 0 : i32
    return %arg0, %arg1 : i32, i32
  }
}

module attributes {stable_mosaic.version = 11 : i64} {
  func.func @_attn_kernel(%arg0: i32, %arg1: memref<1x8x32xbf16, #tpu.memory_space<vmem>>, %arg2: memref<1x8x32xbf16, #tpu.memory_space<vmem>>, %arg3: memref<1x8x32xbf16, #tpu.memory_space<vmem>>, %arg4: memref<1x8x8xf32, #tpu.memory_space<vmem>>, %arg5: memref<1x8x32xf32, #tpu.memory_space<vmem>>) attributes {dimension_semantics = [#tpu.dimension_semantics<parallel>], iteration_bounds = array<i64: 2>, scalar_prefetch = 0 : i64, scratch_operands = 0 : i64, tpu.core_type = #tpu.core_type<tc>, window_params = [{transform_indices = @transform_0, window_bounds = array<i64: 1, 8, 32>}, {transform_indices = @transform_1, window_bounds = array<i64: 1, 8, 32>}, {transform_indices = @transform_2, window_bounds = array<i64: 1, 8, 32>}, {transform_indices = @transform_3, window_bounds = array<i64: 1, 8, 8>}, {transform_indices = @transform_4, window_bounds = array<i64: 1, 8, 32>}]} {
    %c0 = arith.constant 0 : index
    %c0_0 = arith.constant 0 : index
    %c0_1 = arith.constant 0 : index
    %0 = vector.load %arg1[%c0, %c0_0, %c0_1] : memref<1x8x32xbf16, #tpu.memory_space<vmem>>, vector<1x8x32xbf16>
    %1 = vector.shape_cast %0 : vector<1x8x32xbf16> to vector<8x32xbf16>
    %cst = arith.constant 3.535160e-01 : bf16
    %2 = vector.broadcast %cst : bf16 to vector<8x32xbf16>
    %3 = arith.mulf %1, %2 : vector<8x32xbf16>
    %c0_2 = arith.constant 0 : index
    %c0_3 = arith.constant 0 : index
    %c0_4 = arith.constant 0 : index
    %4 = vector.load %arg2[%c0_2, %c0_3, %c0_4] : memref<1x8x32xbf16, #tpu.memory_space<vmem>>, vector<1x8x32xbf16>
    %5 = vector.shape_cast %4 : vector<1x8x32xbf16> to vector<8x32xbf16>
    %c0_5 = arith.constant 0 : index
    %c0_6 = arith.constant 0 : index
    %c0_7 = arith.constant 0 : index
    %6 = vector.load %arg3[%c0_5, %c0_6, %c0_7] : memref<1x8x32xbf16, #tpu.memory_space<vmem>>, vector<1x8x32xbf16>
    %7 = vector.shape_cast %6 : vector<1x8x32xbf16> to vector<8x32xbf16>
    %c0_8 = arith.constant 0 : index
    %c0_9 = arith.constant 0 : index
    %c0_10 = arith.constant 0 : index
    %8 = vector.load %arg4[%c0_8, %c0_9, %c0_10] : memref<1x8x8xf32, #tpu.memory_space<vmem>>, vector<1x8x8xf32>
    %9 = vector.shape_cast %8 : vector<1x8x8xf32> to vector<8x8xf32>
    %10 = vector.extract_strided_slice %3 {offsets = [0, 0], sizes = [8, 8], strides = [1, 1]} : vector<8x32xbf16> to vector<8x8xbf16>
    %11 = vector.extract_strided_slice %5 {offsets = [0, 0], sizes = [8, 8], strides = [1, 1]} : vector<8x32xbf16> to vector<8x8xbf16>
    %12 = vector.extract_strided_slice %7 {offsets = [0, 0], sizes = [8, 8], strides = [1, 1]} : vector<8x32xbf16> to vector<8x8xbf16>
    %cst_11 = arith.constant dense<0.000000e+00> : vector<8x8xf32>
    %13 = tpu.matmul %10, %11, %cst_11 {dimension_numbers = #tpu.dot_dimension_numbers<[1], [1], [0], [0], [0, 0, 1, 0], [], []>} : vector<8x8xbf16>, vector<8x8xbf16>, vector<8x8xf32> -> vector<8x8xf32>
    %14 = arith.addf %13, %9 : vector<8x8xf32>
    %cst_12 = arith.constant dense<0xFF800000> : vector<8xf32>
    %15 = vector.multi_reduction <maximumf>, %14, %cst_12 [1] : vector<8x8xf32> to vector<8xf32>
    %16 = vector.shape_cast %15 : vector<8xf32> to vector<8x1xf32>
    %17 = vector.broadcast %16 : vector<8x1xf32> to vector<8x8xf32>
    %18 = arith.subf %14, %17 : vector<8x8xf32>
    %19 = math.exp %18 : vector<8x8xf32>
    %cst_13 = arith.constant dense<0.000000e+00> : vector<8xf32>
    %20 = vector.multi_reduction <add>, %19, %cst_13 [1] : vector<8x8xf32> to vector<8xf32>
    %21 = vector.shape_cast %20 : vector<8xf32> to vector<8x1xf32>
    %22 = arith.truncf %19 : vector<8x8xf32> to vector<8x8xbf16>
    %cst_14 = arith.constant dense<0.000000e+00> : vector<8x8xf32>
    %23 = tpu.matmul %22, %12, %cst_14 {dimension_numbers = #tpu.dot_dimension_numbers<[1], [0], [0], [1], [0, 0, 1, 1], [], []>} : vector<8x8xbf16>, vector<8x8xbf16>, vector<8x8xf32> -> vector<8x8xf32>
    %24 = tpu.reciprocal %21 {approx = true} : vector<8x1xf32> -> vector<8x1xf32>
    %25 = vector.broadcast %24 : vector<8x1xf32> to vector<8x8xf32>
    %26 = arith.mulf %23, %25 : vector<8x8xf32>
    %27 = vector.extract_strided_slice %3 {offsets = [0, 8], sizes = [8, 8], strides = [1, 1]} : vector<8x32xbf16> to vector<8x8xbf16>
    %28 = vector.extract_strided_slice %5 {offsets = [0, 8], sizes = [8, 8], strides = [1, 1]} : vector<8x32xbf16> to vector<8x8xbf16>
    %29 = vector.extract_strided_slice %7 {offsets = [0, 8], sizes = [8, 8], strides = [1, 1]} : vector<8x32xbf16> to vector<8x8xbf16>
    %cst_15 = arith.constant dense<0.000000e+00> : vector<8x8xf32>
    %30 = tpu.matmul %27, %28, %cst_15 {dimension_numbers = #tpu.dot_dimension_numbers<[1], [1], [0], [0], [0, 0, 1, 0], [], []>} : vector<8x8xbf16>, vector<8x8xbf16>, vector<8x8xf32> -> vector<8x8xf32>
    %31 = arith.addf %30, %9 : vector<8x8xf32>
    %cst_16 = arith.constant dense<0xFF800000> : vector<8xf32>
    %32 = vector.multi_reduction <maximumf>, %31, %cst_16 [1] : vector<8x8xf32> to vector<8xf32>
    %33 = vector.shape_cast %32 : vector<8xf32> to vector<8x1xf32>
    %34 = vector.broadcast %33 : vector<8x1xf32> to vector<8x8xf32>
    %35 = arith.subf %31, %34 : vector<8x8xf32>
    %36 = math.exp %35 : vector<8x8xf32>
    %cst_17 = arith.constant dense<0.000000e+00> : vector<8xf32>
    %37 = vector.multi_reduction <add>, %36, %cst_17 [1] : vector<8x8xf32> to vector<8xf32>
    %38 = vector.shape_cast %37 : vector<8xf32> to vector<8x1xf32>
    %39 = arith.truncf %36 : vector<8x8xf32> to vector<8x8xbf16>
    %cst_18 = arith.constant dense<0.000000e+00> : vector<8x8xf32>
    %40 = tpu.matmul %39, %29, %cst_18 {dimension_numbers = #tpu.dot_dimension_numbers<[1], [0], [0], [1], [0, 0, 1, 1], [], []>} : vector<8x8xbf16>, vector<8x8xbf16>, vector<8x8xf32> -> vector<8x8xf32>
    %41 = tpu.reciprocal %38 {approx = true} : vector<8x1xf32> -> vector<8x1xf32>
    %42 = vector.broadcast %41 : vector<8x1xf32> to vector<8x8xf32>
    %43 = arith.mulf %40, %42 : vector<8x8xf32>
    %44 = vector.extract_strided_slice %3 {offsets = [0, 16], sizes = [8, 8], strides = [1, 1]} : vector<8x32xbf16> to vector<8x8xbf16>
    %45 = vector.extract_strided_slice %5 {offsets = [0, 16], sizes = [8, 8], strides = [1, 1]} : vector<8x32xbf16> to vector<8x8xbf16>
    %46 = vector.extract_strided_slice %7 {offsets = [0, 16], sizes = [8, 8], strides = [1, 1]} : vector<8x32xbf16> to vector<8x8xbf16>
    %cst_19 = arith.constant dense<0.000000e+00> : vector<8x8xf32>
    %47 = tpu.matmul %44, %45, %cst_19 {dimension_numbers = #tpu.dot_dimension_numbers<[1], [1], [0], [0], [0, 0, 1, 0], [], []>} : vector<8x8xbf16>, vector<8x8xbf16>, vector<8x8xf32> -> vector<8x8xf32>
    %48 = arith.addf %47, %9 : vector<8x8xf32>
    %cst_20 = arith.constant dense<0xFF800000> : vector<8xf32>
    %49 = vector.multi_reduction <maximumf>, %48, %cst_20 [1] : vector<8x8xf32> to vector<8xf32>
    %50 = vector.shape_cast %49 : vector<8xf32> to vector<8x1xf32>
    %51 = vector.broadcast %50 : vector<8x1xf32> to vector<8x8xf32>
    %52 = arith.subf %48, %51 : vector<8x8xf32>
    %53 = math.exp %52 : vector<8x8xf32>
    %cst_21 = arith.constant dense<0.000000e+00> : vector<8xf32>
    %54 = vector.multi_reduction <add>, %53, %cst_21 [1] : vector<8x8xf32> to vector<8xf32>
    %55 = vector.shape_cast %54 : vector<8xf32> to vector<8x1xf32>
    %56 = arith.truncf %53 : vector<8x8xf32> to vector<8x8xbf16>
    %cst_22 = arith.constant dense<0.000000e+00> : vector<8x8xf32>
    %57 = tpu.matmul %56, %46, %cst_22 {dimension_numbers = #tpu.dot_dimension_numbers<[1], [0], [0], [1], [0, 0, 1, 1], [], []>} : vector<8x8xbf16>, vector<8x8xbf16>, vector<8x8xf32> -> vector<8x8xf32>
    %58 = tpu.reciprocal %55 {approx = true} : vector<8x1xf32> -> vector<8x1xf32>
    %59 = vector.broadcast %58 : vector<8x1xf32> to vector<8x8xf32>
    %60 = arith.mulf %57, %59 : vector<8x8xf32>
    %61 = vector.extract_strided_slice %3 {offsets = [0, 24], sizes = [8, 8], strides = [1, 1]} : vector<8x32xbf16> to vector<8x8xbf16>
    %62 = vector.extract_strided_slice %5 {offsets = [0, 24], sizes = [8, 8], strides = [1, 1]} : vector<8x32xbf16> to vector<8x8xbf16>
    %63 = vector.extract_strided_slice %7 {offsets = [0, 24], sizes = [8, 8], strides = [1, 1]} : vector<8x32xbf16> to vector<8x8xbf16>
    %cst_23 = arith.constant dense<0.000000e+00> : vector<8x8xf32>
    %64 = tpu.matmul %61, %62, %cst_23 {dimension_numbers = #tpu.dot_dimension_numbers<[1], [1], [0], [0], [0, 0, 1, 0], [], []>} : vector<8x8xbf16>, vector<8x8xbf16>, vector<8x8xf32> -> vector<8x8xf32>
    %65 = arith.addf %64, %9 : vector<8x8xf32>
    %cst_24 = arith.constant dense<0xFF800000> : vector<8xf32>
    %66 = vector.multi_reduction <maximumf>, %65, %cst_24 [1] : vector<8x8xf32> to vector<8xf32>
    %67 = vector.shape_cast %66 : vector<8xf32> to vector<8x1xf32>
    %68 = vector.broadcast %67 : vector<8x1xf32> to vector<8x8xf32>
    %69 = arith.subf %65, %68 : vector<8x8xf32>
    %70 = math.exp %69 : vector<8x8xf32>
    %cst_25 = arith.constant dense<0.000000e+00> : vector<8xf32>
    %71 = vector.multi_reduction <add>, %70, %cst_25 [1] : vector<8x8xf32> to vector<8xf32>
    %72 = vector.shape_cast %71 : vector<8xf32> to vector<8x1xf32>
    %73 = arith.truncf %70 : vector<8x8xf32> to vector<8x8xbf16>
    %cst_26 = arith.constant dense<0.000000e+00> : vector<8x8xf32>
    %74 = tpu.matmul %73, %63, %cst_26 {dimension_numbers = #tpu.dot_dimension_numbers<[1], [0], [0], [1], [0, 0, 1, 1], [], []>} : vector<8x8xbf16>, vector<8x8xbf16>, vector<8x8xf32> -> vector<8x8xf32>
    %75 = tpu.reciprocal %72 {approx = true} : vector<8x1xf32> -> vector<8x1xf32>
    %76 = vector.broadcast %75 : vector<8x1xf32> to vector<8x8xf32>
    %77 = arith.mulf %74, %76 : vector<8x8xf32>
    %78 = tpu.concatenate %26, %43, %60, %77 in 1 : vector<8x8xf32>, vector<8x8xf32>, vector<8x8xf32>, vector<8x8xf32> -> vector<8x32xf32>
    %c0_27 = arith.constant 0 : index
    %c0_28 = arith.constant 0 : index
    %c0_29 = arith.constant 0 : index
    %79 = vector.load %arg5[%c0_27, %c0_28, %c0_29] : memref<1x8x32xf32, #tpu.memory_space<vmem>>, vector<1x8x32xf32>
    %80 = vector.shape_cast %79 : vector<1x8x32xf32> to vector<8x32xf32>
    %81 = vector.shape_cast %78 : vector<8x32xf32> to vector<1x8x32xf32>
    tpu.vector_store %arg5[%c0_27, %c0_28, %c0_29], %81 {strides = array<i32>} : memref<1x8x32xf32, #tpu.memory_space<vmem>>, vector<1x8x32xf32>,
    return
  }
  func.func @transform_0(%arg0: i32) -> (i32, i32, i32) {
    %c0_i32 = arith.constant 0 : i32
    %c0_i32_0 = arith.constant 0 : i32
    %c0_i32_1 = arith.constant 0 : i32
    return %arg0, %c0_i32, %c0_i32_0 : i32, i32, i32
  }
  func.func @transform_1(%arg0: i32) -> (i32, i32, i32) {
    %c0_i32 = arith.constant 0 : i32
    %c0_i32_0 = arith.constant 0 : i32
    %c0_i32_1 = arith.constant 0 : i32
    return %arg0, %c0_i32, %c0_i32_0 : i32, i32, i32
  }
  func.func @transform_2(%arg0: i32) -> (i32, i32, i32) {
    %c0_i32 = arith.constant 0 : i32
    %c0_i32_0 = arith.constant 0 : i32
    %c0_i32_1 = arith.constant 0 : i32
    return %arg0, %c0_i32, %c0_i32_0 : i32, i32, i32
  }
  func.func @transform_3(%arg0: i32) -> (i32, i32, i32) {
    %c0_i32 = arith.constant 0 : i32
    %c0_i32_0 = arith.constant 0 : i32
    %c0_i32_1 = arith.constant 0 : i32
    return %arg0, %c0_i32, %c0_i32_0 : i32, i32, i32
  }
  func.func @transform_4(%arg0: i32) -> (i32, i32, i32) {
    %c0_i32 = arith.constant 0 : i32
    %c0_i32_0 = arith.constant 0 : i32
    %c0_i32_1 = arith.constant 0 : i32
    return %arg0, %c0_i32, %c0_i32_0 : i32, i32, i32
  }
}

module attributes {stable_mosaic.version = 11 : i64} {
  func.func @_matmul_kernel(%arg0: i32, %arg1: i32, %arg2: i32, %arg3: memref<16x32xbf16, #tpu.memory_space<vmem>>, %arg4: memref<32x32xbf16, #tpu.memory_space<vmem>>, %arg5: memref<1x32xf32, #tpu.memory_space<vmem>>, %arg6: memref<16x32xf32, #tpu.memory_space<vmem>>, %arg7: memref<16x32xf32, #tpu.memory_space<vmem>>) attributes {dimension_semantics = [#tpu.dimension_semantics<parallel>, #tpu.dimension_semantics<parallel>, #tpu.dimension_semantics<arbitrary>], iteration_bounds = array<i64: 1, 1, 1>, scalar_prefetch = 0 : i64, scratch_operands = 1 : i64, tpu.core_type = #tpu.core_type<tc>, window_params = [{transform_indices = @transform_0, window_bounds = array<i64: 16, 32>}, {transform_indices = @transform_1, window_bounds = array<i64: 32, 32>}, {transform_indices = @transform_2, window_bounds = array<i64: 1, 32>}, {transform_indices = @transform_3, window_bounds = array<i64: 16, 32>}]} {
    %c0_i32 = arith.constant 0 : i32
    %0 = arith.cmpi eq, %arg2, %c0_i32 : i32
    %1 = arith.extui %0 : i1 to i32
    %c0_i32_0 = arith.constant 0 : i32
    %2 = arith.cmpi ne, %1, %c0_i32_0 : i32
    scf.if %2 {
      %cst_10 = arith.constant 0.000000e+00 : f32
      %12 = vector.broadcast %cst_10 : f32 to vector<16x32xf32>
      %c0_11 = arith.constant 0 : index
      %c0_12 = arith.constant 0 : index
      %13 = vector.load %arg7[%c0_11, %c0_12] : memref<16x32xf32, #tpu.memory_space<vmem>>, vector<16x32xf32>
      tpu.vector_store %arg7[%c0_11, %c0_12], %12 {strides = array<i32>} : memref<16x32xf32, #tpu.memory_space<vmem>>, vector<16x32xf32>,
    } else {
    }
    %c0 = arith.constant 0 : index
    %c0_1 = arith.constant 0 : index
    %3 = vector.load %arg7[%c0, %c0_1] : memref<16x32xf32, #tpu.memory_space<vmem>>, vector<16x32xf32>
    %c0_2 = arith.constant 0 : index
    %c0_3 = arith.constant 0 : index
    %4 = vector.load %arg3[%c0_2, %c0_3] : memref<16x32xbf16, #tpu.memory_space<vmem>>, vector<16x32xbf16>
    %c0_4 = arith.constant 0 : index
    %c0_5 = arith.constant 0 : index
    %5 = vector.load %arg4[%c0_4, %c0_5] : memref<32x32xbf16, #tpu.memory_space<vmem>>, vector<32x32xbf16>
    %cst = arith.constant dense<0.000000e+00> : vector<16x32xf32>
    %6 = tpu.matmul %4, %5, %cst {dimension_numbers = #tpu.dot_dimension_numbers<[1], [0], [0], [1], [0, 0, 1, 1], [], []>} : vector<16x32xbf16>, vector<32x32xbf16>, vector<16x32xf32> -> vector<16x32xf32>
    %7 = arith.addf %3, %6 : vector<16x32xf32>
    %c0_6 = arith.constant 0 : index
    %c0_7 = arith.constant 0 : index
    %8 = vector.load %arg7[%c0_6, %c0_7] : memref<16x32xf32, #tpu.memory_space<vmem>>, vector<16x32xf32>
    tpu.vector_store %arg7[%c0_6, %c0_7], %7 {strides = array<i32>} : memref<16x32xf32, #tpu.memory_space<vmem>>, vector<16x32xf32>,
    %c0_i32_8 = arith.constant 0 : i32
    %9 = arith.cmpi eq, %arg2, %c0_i32_8 : i32
    %10 = arith.extui %9 : i1 to i32
    %c0_i32_9 = arith.constant 0 : i32
    %11 = arith.cmpi ne, %10, %c0_i32_9 : i32
    scf.if %11 {
      %c0_10 = arith.constant 0 : index
      %c0_11 = arith.constant 0 : index
      %12 = vector.load %arg7[%c0_10, %c0_11] : memref<16x32xf32, #tpu.memory_space<vmem>>, vector<16x32xf32>
      %c0_12 = arith.constant 0 : index
      %c0_13 = arith.constant 0 : index
      %13 = vector.load %arg5[%c0_12, %c0_13] : memref<1x32xf32, #tpu.memory_space<vmem>>, vector<1x32xf32>
      %14 = vector.broadcast %13 : vector<1x32xf32> to vector<16x32xf32>
      %15 = arith.addf %12, %14 : vector<16x32xf32>
      %c0_14 = arith.constant 0 : index
      %c0_15 = arith.constant 0 : index
      %16 = vector.load %arg6[%c0_14, %c0_15] : memref<16x32xf32, #tpu.memory_space<vmem>>, vector<16x32xf32>
      tpu.vector_store %arg6[%c0_14, %c0_15], %15 {strides = array<i32>} : memref<16x32xf32, #tpu.memory_space<vmem>>, vector<16x32xf32>,
    } else {
    }
    return
  }
  func.func @transform_0(%arg0: i32, %arg1: i32, %arg2: i32) -> (i32, i32) {
    %c0_i32 = arith.constant 0 : i32
    return %arg0, %arg2 : i32, i32
  }
  func.func @transform_1(%arg0: i32, %arg1: i32, %arg2: i32) -> (i32, i32) {
    %c0_i32 = arith.constant 0 : i32
    return %arg2, %arg1 : i32, i32
  }
  func.func @transform_2(%arg0: i32, %arg1: i32, %arg2: i32) -> (i32, i32) {
    %c0_i32 = arith.constant 0 : i32
    %c0_i32_0 = arith.constant 0 : i32
    return %c0_i32, %arg1 : i32, i32
  }
  func.func @transform_3(%arg0: i32, %arg1: i32, %arg2: i32) -> (i32, i32) {
    %c0_i32 = arith.constant 0 : i32
    return %arg0, %arg1 : i32, i32
  }
}

module attributes {stable_mosaic.version = 11 : i64} {
  func.func @_add_ln_kernel(%arg0: i32, %arg1: memref<16x32xf32, #tpu.memory_space<vmem>>, %arg2: memref<16x32xf32, #tpu.memory_space<vmem>>, %arg3: memref<1x32xf32, #tpu.memory_space<vmem>>, %arg4: memref<1x32xf32, #tpu.memory_space<vmem>>, %arg5: memref<16x32xf32, #tpu.memory_space<vmem>>) attributes {dimension_semantics = [#tpu.dimension_semantics<parallel>], iteration_bounds = array<i64: 1>, scalar_prefetch = 0 : i64, scratch_operands = 0 : i64, tpu.core_type = #tpu.core_type<tc>, window_params = [{transform_indices = @transform_0, window_bounds = array<i64: 16, 32>}, {transform_indices = @transform_1, window_bounds = array<i64: 16, 32>}, {pipeline_mode = #tpu.pipeline_mode<synchronous>, transform_indices = @transform_2, window_bounds = array<i64: 1, 32>}, {pipeline_mode = #tpu.pipeline_mode<synchronous>, transform_indices = @transform_3, window_bounds = array<i64: 1, 32>}, {transform_indices = @transform_4, window_bounds = array<i64: 16, 32>}]} {
    %c0 = arith.constant 0 : index
    %c0_0 = arith.constant 0 : index
    %0 = vector.load %arg1[%c0, %c0_0] : memref<16x32xf32, #tpu.memory_space<vmem>>, vector<16x32xf32>
    %c0_1 = arith.constant 0 : index
    %c0_2 = arith.constant 0 : index
    %1 = vector.load %arg2[%c0_1, %c0_2] : memref<16x32xf32, #tpu.memory_space<vmem>>, vector<16x32xf32>
    %2 = arith.addf %0, %1 : vector<16x32xf32>
    %cst = arith.constant dense<0.000000e+00> : vector<16xf32>
    %3 = vector.multi_reduction <add>, %2, %cst [1] : vector<16x32xf32> to vector<16xf32>
    %4 = vector.shape_cast %3 : vector<16xf32> to vector<16x1xf32>
    %cst_3 = arith.constant 3.200000e+01 : f32
    %5 = vector.broadcast %cst_3 : f32 to vector<16x1xf32>
    %6 = arith.divf %4, %5 : vector<16x1xf32>
    %7 = vector.broadcast %6 : vector<16x1xf32> to vector<16x32xf32>
    %8 = arith.subf %2, %7 : vector<16x32xf32>
    %9 = arith.mulf %8, %8 : vector<16x32xf32>
    %cst_4 = arith.constant dense<0.000000e+00> : vector<16xf32>
    %10 = vector.multi_reduction <add>, %9, %cst_4 [1] : vector<16x32xf32> to vector<16xf32>
    %11 = vector.shape_cast %10 : vector<16xf32> to vector<16x1xf32>
    %cst_5 = arith.constant 3.200000e+01 : f32
    %12 = vector.broadcast %cst_5 : f32 to vector<16x1xf32>
    %13 = arith.divf %11, %12 : vector<16x1xf32>
    %14 = vector.broadcast %6 : vector<16x1xf32> to vector<16x32xf32>
    %15 = arith.subf %2, %14 : vector<16x32xf32>
    %cst_6 = arith.constant 9.99999974E-6 : f32
    %16 = vector.broadcast %cst_6 : f32 to vector<16x1xf32>
    %17 = arith.addf %13, %16 : vector<16x1xf32>
    %18 = math.rsqrt %17 : vector<16x1xf32>
    %19 = vector.broadcast %18 : vector<16x1xf32> to vector<16x32xf32>
    %20 = arith.mulf %15, %19 : vector<16x32xf32>
    %c0_7 = arith.constant 0 : index
    %c0_8 = arith.constant 0 : index
    %21 = vector.load %arg3[%c0_7, %c0_8] : memref<1x32xf32, #tpu.memory_space<vmem>>, vector<1x32xf32>
    %22 = vector.broadcast %21 : vector<1x32xf32> to vector<16x32xf32>
    %23 = arith.mulf %20, %22 : vector<16x32xf32>
    %c0_9 = arith.constant 0 : index
    %c0_10 = arith.constant 0 : index
    %24 = vector.load %arg4[%c0_9, %c0_10] : memref<1x32xf32, #tpu.memory_space<vmem>>, vector<1x32xf32>
    %25 = vector.broadcast %24 : vector<1x32xf32> to vector<16x32xf32>
    %26 = arith.addf %23, %25 : vector<16x32xf32>
    %c0_11 = arith.constant 0 : index
    %c0_12 = arith.constant 0 : index
    %27 = vector.load %arg5[%c0_11, %c0_12] : memref<16x32xf32, #tpu.memory_space<vmem>>, vector<16x32xf32>
    tpu.vector_store %arg5[%c0_11, %c0_12], %26 {strides = array<i32>} : memref<16x32xf32, #tpu.memory_space<vmem>>, vector<16x32xf32>,
    return
  }
  func.func @transform_0(%arg0: i32) -> (i32, i32) {
    %c0_i32 = arith.constant 0 : i32
    %c0_i32_0 = arith.constant 0 : i32
    return %arg0, %c0_i32 : i32, i32
  }
  func.func @transform_1(%arg0: i32) -> (i32, i32) {
    %c0_i32 = arith.constant 0 : i32
    %c0_i32_0 = arith.constant 0 : i32
    return %arg0, %c0_i32 : i32, i32
  }
  func.func @transform_2(%arg0: i32) -> (i32, i32) {
    %c0_i32 = arith.constant 0 : i32
    %c0_i32_0 = arith.constant 0 : i32
    %c0_i32_1 = arith.constant 0 : i32
    return %c0_i32, %c0_i32_0 : i32, i32
  }
  func.func @transform_3(%arg0: i32) -> (i32, i32) {
    %c0_i32 = arith.constant 0 : i32
    %c0_i32_0 = arith.constant 0 : i32
    %c0_i32_1 = arith.constant 0 : i32
    return %c0_i32, %c0_i32_0 : i32, i32
  }
  func.func @transform_4(%arg0: i32) -> (i32, i32) {
    %c0_i32 = arith.constant 0 : i32
    %c0_i32_0 = arith.constant 0 : i32
    return %arg0, %c0_i32 : i32, i32
  }
}

module attributes {stable_mosaic.version = 11 : i64} {
  func.func @_matmul_kernel(%arg0: i32, %arg1: i32, %arg2: i32, %arg3: memref<16x32xbf16, #tpu.memory_space<vmem>>, %arg4: memref<32x64xbf16, #tpu.memory_space<vmem>>, %arg5: memref<1x64xf32, #tpu.memory_space<vmem>>, %arg6: memref<16x64xf32, #tpu.memory_space<vmem>>, %arg7: memref<16x64xf32, #tpu.memory_space<vmem>>) attributes {dimension_semantics = [#tpu.dimension_semantics<parallel>, #tpu.dimension_semantics<parallel>, #tpu.dimension_semantics<arbitrary>], iteration_bounds = array<i64: 1, 1, 1>, scalar_prefetch = 0 : i64, scratch_operands = 1 : i64, tpu.core_type = #tpu.core_type<tc>, window_params = [{transform_indices = @transform_0, window_bounds = array<i64: 16, 32>}, {transform_indices = @transform_1, window_bounds = array<i64: 32, 64>}, {transform_indices = @transform_2, window_bounds = array<i64: 1, 64>}, {transform_indices = @transform_3, window_bounds = array<i64: 16, 64>}]} {
    %c0_i32 = arith.constant 0 : i32
    %0 = arith.cmpi eq, %arg2, %c0_i32 : i32
    %1 = arith.extui %0 : i1 to i32
    %c0_i32_0 = arith.constant 0 : i32
    %2 = arith.cmpi ne, %1, %c0_i32_0 : i32
    scf.if %2 {
      %cst_10 = arith.constant 0.000000e+00 : f32
      %12 = vector.broadcast %cst_10 : f32 to vector<16x64xf32>
      %c0_11 = arith.constant 0 : index
      %c0_12 = arith.constant 0 : index
      %13 = vector.load %arg7[%c0_11, %c0_12] : memref<16x64xf32, #tpu.memory_space<vmem>>, vector<16x64xf32>
      tpu.vector_store %arg7[%c0_11, %c0_12], %12 {strides = array<i32>} : memref<16x64xf32, #tpu.memory_space<vmem>>, vector<16x64xf32>,
    } else {
    }
    %c0 = arith.constant 0 : index
    %c0_1 = arith.constant 0 : index
    %3 = vector.load %arg7[%c0, %c0_1] : memref<16x64xf32, #tpu.memory_space<vmem>>, vector<16x64xf32>
    %c0_2 = arith.constant 0 : index
    %c0_3 = arith.constant 0 : index
    %4 = vector.load %arg3[%c0_2, %c0_3] : memref<16x32xbf16, #tpu.memory_space<vmem>>, vector<16x32xbf16>
    %c0_4 = arith.constant 0 : index
    %c0_5 = arith.constant 0 : index
    %5 = vector.load %arg4[%c0_4, %c0_5] : memref<32x64xbf16, #tpu.memory_space<vmem>>, vector<32x64xbf16>
    %cst = arith.constant dense<0.000000e+00> : vector<16x64xf32>
    %6 = tpu.matmul %4, %5, %cst {dimension_numbers = #tpu.dot_dimension_numbers<[1], [0], [0], [1], [0, 0, 1, 1], [], []>} : vector<16x32xbf16>, vector<32x64xbf16>, vector<16x64xf32> -> vector<16x64xf32>
    %7 = arith.addf %3, %6 : vector<16x64xf32>
    %c0_6 = arith.constant 0 : index
    %c0_7 = arith.constant 0 : index
    %8 = vector.load %arg7[%c0_6, %c0_7] : memref<16x64xf32, #tpu.memory_space<vmem>>, vector<16x64xf32>
    tpu.vector_store %arg7[%c0_6, %c0_7], %7 {strides = array<i32>} : memref<16x64xf32, #tpu.memory_space<vmem>>, vector<16x64xf32>,
    %c0_i32_8 = arith.constant 0 : i32
    %9 = arith.cmpi eq, %arg2, %c0_i32_8 : i32
    %10 = arith.extui %9 : i1 to i32
    %c0_i32_9 = arith.constant 0 : i32
    %11 = arith.cmpi ne, %10, %c0_i32_9 : i32
    scf.if %11 {
      %c0_10 = arith.constant 0 : index
      %c0_11 = arith.constant 0 : index
      %12 = vector.load %arg7[%c0_10, %c0_11] : memref<16x64xf32, #tpu.memory_space<vmem>>, vector<16x64xf32>
      %c0_12 = arith.constant 0 : index
      %c0_13 = arith.constant 0 : index
      %13 = vector.load %arg5[%c0_12, %c0_13] : memref<1x64xf32, #tpu.memory_space<vmem>>, vector<1x64xf32>
      %14 = vector.broadcast %13 : vector<1x64xf32> to vector<16x64xf32>
      %15 = arith.addf %12, %14 : vector<16x64xf32>
      %c0_14 = arith.constant 0 : index
      %c0_15 = arith.constant 0 : index
      %16 = vector.load %arg6[%c0_14, %c0_15] : memref<16x64xf32, #tpu.memory_space<vmem>>, vector<16x64xf32>
      tpu.vector_store %arg6[%c0_14, %c0_15], %15 {strides = array<i32>} : memref<16x64xf32, #tpu.memory_space<vmem>>, vector<16x64xf32>,
    } else {
    }
    return
  }
  func.func @transform_0(%arg0: i32, %arg1: i32, %arg2: i32) -> (i32, i32) {
    %c0_i32 = arith.constant 0 : i32
    return %arg0, %arg2 : i32, i32
  }
  func.func @transform_1(%arg0: i32, %arg1: i32, %arg2: i32) -> (i32, i32) {
    %c0_i32 = arith.constant 0 : i32
    return %arg2, %arg1 : i32, i32
  }
  func.func @transform_2(%arg0: i32, %arg1: i32, %arg2: i32) -> (i32, i32) {
    %c0_i32 = arith.constant 0 : i32
    %c0_i32_0 = arith.constant 0 : i32
    return %c0_i32, %arg1 : i32, i32
  }
  func.func @transform_3(%arg0: i32, %arg1: i32, %arg2: i32) -> (i32, i32) {
    %c0_i32 = arith.constant 0 : i32
    return %arg0, %arg1 : i32, i32
  }
}

module attributes {stable_mosaic.version = 11 : i64} {
  func.func @_ffn_kernel(%arg0: i32, %arg1: memref<16x32xbf16, #tpu.memory_space<vmem>>, %arg2: memref<32x64xbf16, #tpu.memory_space<vmem>>, %arg3: memref<1x64xf32, #tpu.memory_space<vmem>>, %arg4: memref<64x32xbf16, #tpu.memory_space<vmem>>, %arg5: memref<1x32xf32, #tpu.memory_space<vmem>>, %arg6: memref<16x32xf32, #tpu.memory_space<vmem>>) attributes {dimension_semantics = [#tpu.dimension_semantics<parallel>], iteration_bounds = array<i64: 1>, scalar_prefetch = 0 : i64, scratch_operands = 0 : i64, tpu.core_type = #tpu.core_type<tc>, window_params = [{transform_indices = @transform_0, window_bounds = array<i64: 16, 32>}, {pipeline_mode = #tpu.pipeline_mode<synchronous>, transform_indices = @transform_1, window_bounds = array<i64: 32, 64>}, {pipeline_mode = #tpu.pipeline_mode<synchronous>, transform_indices = @transform_2, window_bounds = array<i64: 1, 64>}, {pipeline_mode = #tpu.pipeline_mode<synchronous>, transform_indices = @transform_3, window_bounds = array<i64: 64, 32>}, {pipeline_mode = #tpu.pipeline_mode<synchronous>, transform_indices = @transform_4, window_bounds = array<i64: 1, 32>}, {transform_indices = @transform_5, window_bounds = array<i64: 16, 32>}]} {
    %c0 = arith.constant 0 : index
    %c0_0 = arith.constant 0 : index
    %0 = vector.load %arg1[%c0, %c0_0] : memref<16x32xbf16, #tpu.memory_space<vmem>>, vector<16x32xbf16>
    %c0_1 = arith.constant 0 : index
    %c0_2 = arith.constant 0 : index
    %1 = vector.load %arg2[%c0_1, %c0_2] : memref<32x64xbf16, #tpu.memory_space<vmem>>, vector<32x64xbf16>
    %cst = arith.constant dense<0.000000e+00> : vector<16x64xf32>
    %2 = tpu.matmul %0, %1, %cst {dimension_numbers = #tpu.dot_dimension_numbers<[1], [0], [0], [1], [0, 0, 1, 1], [], []>} : vector<16x32xbf16>, vector<32x64xbf16>, vector<16x64xf32> -> vector<16x64xf32>
    %c0_3 = arith.constant 0 : index
    %c0_4 = arith.constant 0 : index
    %3 = vector.load %arg3[%c0_3, %c0_4] : memref<1x64xf32, #tpu.memory_space<vmem>>, vector<1x64xf32>
    %4 = vector.broadcast %3 : vector<1x64xf32> to vector<16x64xf32>
    %5 = arith.addf %2, %4 : vector<16x64xf32>
    %cst_5 = arith.constant 0.000000e+00 : f32
    %6 = vector.broadcast %cst_5 : f32 to vector<16x64xf32>
    %7 = arith.maximumf %5, %6 : vector<16x64xf32>
    %8 = arith.truncf %7 : vector<16x64xf32> to vector<16x64xbf16>
    %c0_6 = arith.constant 0 : index
    %c0_7 = arith.constant 0 : index
    %9 = vector.load %arg4[%c0_6, %c0_7] : memref<64x32xbf16, #tpu.memory_space<vmem>>, vector<64x32xbf16>
    %cst_8 = arith.constant dense<0.000000e+00> : vector<16x32xf32>
    %10 = tpu.matmul %8, %9, %cst_8 {dimension_numbers = #tpu.dot_dimension_numbers<[1], [0], [0], [1], [0, 0, 1, 1], [], []>} : vector<16x64xbf16>, vector<64x32xbf16>, vector<16x32xf32> -> vector<16x32xf32>
    %c0_9 = arith.constant 0 : index
    %c0_10 = arith.constant 0 : index
    %11 = vector.load %arg5[%c0_9, %c0_10] : memref<1x32xf32, #tpu.memory_space<vmem>>, vector<1x32xf32>
    %12 = vector.broadcast %11 : vector<1x32xf32> to vector<16x32xf32>
    %13 = arith.addf %10, %12 : vector<16x32xf32>
    %c0_11 = arith.constant 0 : index
    %c0_12 = arith.constant 0 : index
    %14 = vector.load %arg6[%c0_11, %c0_12] : memref<16x32xf32, #tpu.memory_space<vmem>>, vector<16x32xf32>
    tpu.vector_store %arg6[%c0_11, %c0_12], %13 {strides = array<i32>} : memref<16x32xf32, #tpu.memory_space<vmem>>, vector<16x32xf32>,
    return
  }
  func.func @transform_0(%arg0: i32) -> (i32, i32) {
    %c0_i32 = arith.constant 0 : i32
    %c0_i32_0 = arith.constant 0 : i32
    return %arg0, %c0_i32 : i32, i32
  }
  func.func @transform_1(%arg0: i32) -> (i32, i32) {
    %c0_i32 = arith.constant 0 : i32
    %c0_i32_0 = arith.constant 0 : i32
    %c0_i32_1 = arith.constant 0 : i32
    return %c0_i32, %c0_i32_0 : i32, i32
  }
  func.func @transform_2(%arg0: i32) -> (i32, i32) {
    %c0_i32 = arith.constant 0 : i32
    %c0_i32_0 = arith.constant 0 : i32
    %c0_i32_1 = arith.constant 0 : i32
    return %c0_i32, %c0_i32_0 : i32, i32
  }
  func.func @transform_3(%arg0: i32) -> (i32, i32) {
    %c0_i32 = arith.constant 0 : i32
    %c0_i32_0 = arith.constant 0 : i32
    %c0_i32_1 = arith.constant 0 : i32
    return %c0_i32, %c0_i32_0 : i32, i32
  }
  func.func @transform_4(%arg0: i32) -> (i32, i32) {
    %c0_i32 = arith.constant 0 : i32
    %c0_i32_0 = arith.constant 0 : i32
    %c0_i32_1 = arith.constant 0 : i32
    return %c0_i32, %c0_i32_0 : i32, i32
  }
  func.func @transform_5(%arg0: i32) -> (i32, i32) {
    %c0_i32 = arith.constant 0 : i32
    %c0_i32_0 = arith.constant 0 : i32
    return %arg0, %c0_i32 : i32, i32
  }
}

module attributes {stable_mosaic.version = 11 : i64} {
  func.func @_ln_kernel(%arg0: i32, %arg1: memref<16x32xf32, #tpu.memory_space<vmem>>, %arg2: memref<1x32xf32, #tpu.memory_space<vmem>>, %arg3: memref<1x32xf32, #tpu.memory_space<vmem>>, %arg4: memref<16x32xf32, #tpu.memory_space<vmem>>) attributes {dimension_semantics = [#tpu.dimension_semantics<parallel>], iteration_bounds = array<i64: 1>, scalar_prefetch = 0 : i64, scratch_operands = 0 : i64, tpu.core_type = #tpu.core_type<tc>, window_params = [{transform_indices = @transform_0, window_bounds = array<i64: 16, 32>}, {pipeline_mode = #tpu.pipeline_mode<synchronous>, transform_indices = @transform_1, window_bounds = array<i64: 1, 32>}, {pipeline_mode = #tpu.pipeline_mode<synchronous>, transform_indices = @transform_2, window_bounds = array<i64: 1, 32>}, {transform_indices = @transform_3, window_bounds = array<i64: 16, 32>}]} {
    %c0 = arith.constant 0 : index
    %c0_0 = arith.constant 0 : index
    %0 = vector.load %arg1[%c0, %c0_0] : memref<16x32xf32, #tpu.memory_space<vmem>>, vector<16x32xf32>
    %cst = arith.constant dense<0.000000e+00> : vector<16xf32>
    %1 = vector.multi_reduction <add>, %0, %cst [1] : vector<16x32xf32> to vector<16xf32>
    %2 = vector.shape_cast %1 : vector<16xf32> to vector<16x1xf32>
    %cst_1 = arith.constant 3.200000e+01 : f32
    %3 = vector.broadcast %cst_1 : f32 to vector<16x1xf32>
    %4 = arith.divf %2, %3 : vector<16x1xf32>
    %5 = vector.broadcast %4 : vector<16x1xf32> to vector<16x32xf32>
    %6 = arith.subf %0, %5 : vector<16x32xf32>
    %7 = arith.mulf %6, %6 : vector<16x32xf32>
    %cst_2 = arith.constant dense<0.000000e+00> : vector<16xf32>
    %8 = vector.multi_reduction <add>, %7, %cst_2 [1] : vector<16x32xf32> to vector<16xf32>
    %9 = vector.shape_cast %8 : vector<16xf32> to vector<16x1xf32>
    %cst_3 = arith.constant 3.200000e+01 : f32
    %10 = vector.broadcast %cst_3 : f32 to vector<16x1xf32>
    %11 = arith.divf %9, %10 : vector<16x1xf32>
    %12 = vector.broadcast %4 : vector<16x1xf32> to vector<16x32xf32>
    %13 = arith.subf %0, %12 : vector<16x32xf32>
    %cst_4 = arith.constant 9.99999974E-6 : f32
    %14 = vector.broadcast %cst_4 : f32 to vector<16x1xf32>
    %15 = arith.addf %11, %14 : vector<16x1xf32>
    %16 = math.rsqrt %15 : vector<16x1xf32>
    %17 = vector.broadcast %16 : vector<16x1xf32> to vector<16x32xf32>
    %18 = arith.mulf %13, %17 : vector<16x32xf32>
    %c0_5 = arith.constant 0 : index
    %c0_6 = arith.constant 0 : index
    %19 = vector.load %arg2[%c0_5, %c0_6] : memref<1x32xf32, #tpu.memory_space<vmem>>, vector<1x32xf32>
    %20 = vector.broadcast %19 : vector<1x32xf32> to vector<16x32xf32>
    %21 = arith.mulf %18, %20 : vector<16x32xf32>
    %c0_7 = arith.constant 0 : index
    %c0_8 = arith.constant 0 : index
    %22 = vector.load %arg3[%c0_7, %c0_8] : memref<1x32xf32, #tpu.memory_space<vmem>>, vector<1x32xf32>
    %23 = vector.broadcast %22 : vector<1x32xf32> to vector<16x32xf32>
    %24 = arith.addf %21, %23 : vector<16x32xf32>
    %c0_9 = arith.constant 0 : index
    %c0_10 = arith.constant 0 : index
    %25 = vector.load %arg4[%c0_9, %c0_10] : memref<16x32xf32, #tpu.memory_space<vmem>>, vector<16x32xf32>
    tpu.vector_store %arg4[%c0_9, %c0_10], %24 {strides = array<i32>} : memref<16x32xf32, #tpu.memory_space<vmem>>, vector<16x32xf32>,
    return
  }
  func.func @transform_0(%arg0: i32) -> (i32, i32) {
    %c0_i32 = arith.constant 0 : i32
    %c0_i32_0 = arith.constant 0 : i32
    return %arg0, %c0_i32 : i32, i32
  }
  func.func @transform_1(%arg0: i32) -> (i32, i32) {
    %c0_i32 = arith.constant 0 : i32
    %c0_i32_0 = arith.constant 0 : i32
    %c0_i32_1 = arith.constant 0 : i32
    return %c0_i32, %c0_i32_0 : i32, i32
  }
  func.func @transform_2(%arg0: i32) -> (i32, i32) {
    %c0_i32 = arith.constant 0 : i32
    %c0_i32_0 = arith.constant 0 : i32
    %c0_i32_1 = arith.constant 0 : i32
    return %c0_i32, %c0_i32_0 : i32, i32
  }
  func.func @transform_3(%arg0: i32) -> (i32, i32) {
    %c0_i32 = arith.constant 0 : i32
    %c0_i32_0 = arith.constant 0 : i32
    return %arg0, %c0_i32 : i32, i32
  }
}

module attributes {stable_mosaic.version = 11 : i64} {
  func.func @_matmul_kernel(%arg0: i32, %arg1: i32, %arg2: i32, %arg3: memref<16x32xbf16, #tpu.memory_space<vmem>>, %arg4: memref<32x60xbf16, #tpu.memory_space<vmem>>, %arg5: memref<1x60xf32, #tpu.memory_space<vmem>>, %arg6: memref<16x60xf32, #tpu.memory_space<vmem>>, %arg7: memref<16x60xf32, #tpu.memory_space<vmem>>) attributes {dimension_semantics = [#tpu.dimension_semantics<parallel>, #tpu.dimension_semantics<parallel>, #tpu.dimension_semantics<arbitrary>], iteration_bounds = array<i64: 1, 1, 1>, scalar_prefetch = 0 : i64, scratch_operands = 1 : i64, tpu.core_type = #tpu.core_type<tc>, window_params = [{transform_indices = @transform_0, window_bounds = array<i64: 16, 32>}, {transform_indices = @transform_1, window_bounds = array<i64: 32, 60>}, {transform_indices = @transform_2, window_bounds = array<i64: 1, 60>}, {transform_indices = @transform_3, window_bounds = array<i64: 16, 60>}]} {
    %c0_i32 = arith.constant 0 : i32
    %0 = arith.cmpi eq, %arg2, %c0_i32 : i32
    %1 = arith.extui %0 : i1 to i32
    %c0_i32_0 = arith.constant 0 : i32
    %2 = arith.cmpi ne, %1, %c0_i32_0 : i32
    scf.if %2 {
      %cst_10 = arith.constant 0.000000e+00 : f32
      %12 = vector.broadcast %cst_10 : f32 to vector<16x60xf32>
      %c0_11 = arith.constant 0 : index
      %c0_12 = arith.constant 0 : index
      %13 = vector.load %arg7[%c0_11, %c0_12] : memref<16x60xf32, #tpu.memory_space<vmem>>, vector<16x60xf32>
      tpu.vector_store %arg7[%c0_11, %c0_12], %12 {strides = array<i32>} : memref<16x60xf32, #tpu.memory_space<vmem>>, vector<16x60xf32>,
    } else {
    }
    %c0 = arith.constant 0 : index
    %c0_1 = arith.constant 0 : index
    %3 = vector.load %arg7[%c0, %c0_1] : memref<16x60xf32, #tpu.memory_space<vmem>>, vector<16x60xf32>
    %c0_2 = arith.constant 0 : index
    %c0_3 = arith.constant 0 : index
    %4 = vector.load %arg3[%c0_2, %c0_3] : memref<16x32xbf16, #tpu.memory_space<vmem>>, vector<16x32xbf16>
    %c0_4 = arith.constant 0 : index
    %c0_5 = arith.constant 0 : index
    %5 = vector.load %arg4[%c0_4, %c0_5] : memref<32x60xbf16, #tpu.memory_space<vmem>>, vector<32x60xbf16>
    %cst = arith.constant dense<0.000000e+00> : vector<16x60xf32>
    %6 = tpu.matmul %4, %5, %cst {dimension_numbers = #tpu.dot_dimension_numbers<[1], [0], [0], [1], [0, 0, 1, 1], [], []>} : vector<16x32xbf16>, vector<32x60xbf16>, vector<16x60xf32> -> vector<16x60xf32>
    %7 = arith.addf %3, %6 : vector<16x60xf32>
    %c0_6 = arith.constant 0 : index
    %c0_7 = arith.constant 0 : index
    %8 = vector.load %arg7[%c0_6, %c0_7] : memref<16x60xf32, #tpu.memory_space<vmem>>, vector<16x60xf32>
    tpu.vector_store %arg7[%c0_6, %c0_7], %7 {strides = array<i32>} : memref<16x60xf32, #tpu.memory_space<vmem>>, vector<16x60xf32>,
    %c0_i32_8 = arith.constant 0 : i32
    %9 = arith.cmpi eq, %arg2, %c0_i32_8 : i32
    %10 = arith.extui %9 : i1 to i32
    %c0_i32_9 = arith.constant 0 : i32
    %11 = arith.cmpi ne, %10, %c0_i32_9 : i32
    scf.if %11 {
      %c0_10 = arith.constant 0 : index
      %c0_11 = arith.constant 0 : index
      %12 = vector.load %arg7[%c0_10, %c0_11] : memref<16x60xf32, #tpu.memory_space<vmem>>, vector<16x60xf32>
      %c0_12 = arith.constant 0 : index
      %c0_13 = arith.constant 0 : index
      %13 = vector.load %arg5[%c0_12, %c0_13] : memref<1x60xf32, #tpu.memory_space<vmem>>, vector<1x60xf32>
      %14 = vector.broadcast %13 : vector<1x60xf32> to vector<16x60xf32>
      %15 = arith.addf %12, %14 : vector<16x60xf32>
      %c0_14 = arith.constant 0 : index
      %c0_15 = arith.constant 0 : index
      %16 = vector.load %arg6[%c0_14, %c0_15] : memref<16x60xf32, #tpu.memory_space<vmem>>, vector<16x60xf32>
      tpu.vector_store %arg6[%c0_14, %c0_15], %15 {strides = array<i32>} : memref<16x60xf32, #tpu.memory_space<vmem>>, vector<16x60xf32>,
    } else {
    }
    return
  }
  func.func @transform_0(%arg0: i32, %arg1: i32, %arg2: i32) -> (i32, i32) {
    %c0_i32 = arith.constant 0 : i32
    return %arg0, %arg2 : i32, i32
  }
  func.func @transform_1(%arg0: i32, %arg1: i32, %arg2: i32) -> (i32, i32) {
    %c0_i32 = arith.constant 0 : i32
    return %arg2, %arg1 : i32, i32
  }
  func.func @transform_2(%arg0: i32, %arg1: i32, %arg2: i32) -> (i32, i32) {
    %c0_i32 = arith.constant 0 : i32
    %c0_i32_0 = arith.constant 0 : i32
    return %c0_i32, %arg1 : i32, i32
  }
  func.func @transform_3(%arg0: i32, %arg1: i32, %arg2: i32) -> (i32, i32) {
    %c0_i32 = arith.constant 0 : i32
    return %arg0, %arg1 : i32, i32
  }
}

</mosaic_0001>

<bundles_post_ra>
// kernel: transformer_translator_forward.40
= control target key start
LH: loop header
LB: loop body
LE: loop exit
PB: predicated region body
PF: predicated region fallthrough
CT: control target
= control target key end

     0   :  { %vm23_vm0 = vcmask 261120   ;;  %s136_s0 = inlined_call_operand.vmem [shape: f32[16,32], index: 0, kind: input, shape index: {}]   ;;  %s137_s1 = inlined_call_operand.vmem [shape: f32[16,32], index: 1, kind: input, shape index: {}]   ;;  %s138_s2 = inlined_call_operand.vmem [shape: f32[1,32], index: 2, kind: input, shape index: {}]   ;;  %s139_s3 = inlined_call_operand.vmem [shape: f32[1,32], index: 3, kind: input, shape index: {}]   ;;  %s140_s4 = inlined_call_operand.vmem [shape: f32[16,32], index: 4, kind: output, shape index: {}]  }
   0x1   :  { %v17_v0 = vld [vmem:[%s136_s0] sm:$0xff]  ;;  %v18_v2 = vld [vmem:[%s136_s0 + $0x8] sm:$0xff] }
   0x2   :  { %v19_v1 = vld [vmem:[%s137_s1] sm:$0xff]  ;;  %v20_v4 = vld [vmem:[%s137_s1 + $0x8] sm:$0xff] }
   0x3   :  { %v21_v3 = vadd.f32 %v19_v1, %v17_v0  ;;  %v22_v5 = vadd.f32 %v20_v4, %v18_v2  ;;  %v75_v25 = vld [vmem:[%s138_s2] ss:$0 sm:$0xff] }
   0x4   :  { %v76_v27 = vld [vmem:[%s139_s3] ss:$0 sm:$0xff] }
   0x5   :  { %v24_v6 = vsel %vm23_vm0, %v21_v3, 0.0  ;;  %v27_v7 = vsel %vm23_vm0, %v22_v5, 0.0 }
   0x6   :  { %25 = vadd.xlane.f32.xlu0 %v24_v6 }
   0xa   :  { %28 = vadd.xlane.f32.xlu0 %v27_v7 }
  0x93   :  { %v26_v8 = vpop.xlane.xlu0 %25 }
  0x94   :  { %v31_v9 = vmul.f32 0.03125, %v26_v8 }
  0x96   :  { %v33_v10 = vsub.f32 %v21_v3, %v31_v9 }
  0x97   :  { %v29_v11 = vpop.xlane.xlu0 %28 }
  0x98   :  { %v32_v12 = vmul.f32 0.03125, %v29_v11  ;;  %v35_v13 = vmul.f32 %v33_v10, %v33_v10 }
  0x9a   :  { %v34_v14 = vsub.f32 %v22_v5, %v32_v12  ;;  %v37_v15 = vsel %vm23_vm0, %v35_v13, 0.0 }
  0x9b   :  { %38 = vadd.xlane.f32.xlu1 %v37_v15 }
  0x9c   :  { %v36_v16 = vmul.f32 %v34_v14, %v34_v14 }
  0x9e   :  { %v40_v17 = vsel %vm23_vm0, %v36_v16, 0.0 }
  0x9f   :  { %41 = vadd.xlane.f32.xlu1 %v40_v17 }
 0x128   :  { %v39_v18 = vpop.xlane.xlu1 %38 }
 0x129   :  { %v43_v19 = vmul.f32 0.03125, %v39_v18 }
 0x12b   :  { %v45_v20 = vadd.f32 1e-05, %v43_v19 }
 0x12c   :  { %v42_v21 = vpop.xlane.xlu1 %41 }
 0x12d   :  { %77 = vrsqrt.f32 %v45_v20  ;;  %v44_v22 = vmul.f32 0.03125, %v42_v21 }
 0x12f   :  { %v46_v23 = vadd.f32 1e-05, %v44_v22 }
 0x131   :  { %79 = vrsqrt.f32 %v46_v23 }
 0x137   :  { %v78_v24 = vpop.eup %77 }
 0x138   :  { %v49_v26 = vmul.f32 %v78_v24, %v33_v10 }
 0x13a   :  { %v58_v28 = vmul.f32 %v75_v25, %v49_v26 }
 0x13b   :  { %v80_v29 = vpop.eup %79 }
 0x13c   :  { %v67_v30 = vadd.f32 %v76_v27, %v58_v28  ;;  %v50_v31 = vmul.f32 %v80_v29, %v34_v14 }
 0x13e   :  { %69 = vst.msk [vmem:[%s140_s4] sm:$0xff] %vm23_vm0, %v67_v30  ;;  %v59_v32 = vmul.f32 %v75_v25, %v50_v31 }
 0x140   :  { %v68_v33 = vadd.f32 %v76_v27, %v59_v32 }
 0x142   :  { %70 = vst.msk [vmem:[%s140_s4 + $0x8] sm:$0xff] %vm23_vm0, %v68_v33 }

// kernel: transformer_translator_forward.39
= control target key start
LH: loop header
LB: loop body
LE: loop exit
PB: predicated region body
PF: predicated region fallthrough
CT: control target
= control target key end

     0   :  { %vm19_vm0 = vcmask 261120   ;;  %v137_v0 = vmov 0.0   ;;  %vm138_vm1 = vmmov 0   ;;  %s184_s1 = inlined_call_operand.vmem [shape: bf16[32,32], index: 1, kind: input, shape index: {}]   ;;  %s185_s0 = inlined_call_operand.vmem [shape: bf16[16,32], index: 0, kind: input, shape index: {}]   ;;  %s186_s2 = inlined_call_operand.vmem [shape: f32[1,32], index: 2, kind: input, shape index: {}]   ;;  %s187_s3 = inlined_call_operand.vmem [shape: f32[16,32], index: 3, kind: output, shape index: {}]  }
   0x1   :  { %124 = vmatprep.subr.bf16.mxu0 %v137_v0  ;;  %v134_v1 = vld [vmem:[%s184_s1] sm:$0xff]   ;;  %128 = vmatprep.mubr.msk.bf16.mxu0 %vm138_vm1, %v137_v0  ;;  %20 = vst.msk [vmem:[#allocation2] sm:$0xff] %vm19_vm0, %v137_v0  ;;  %21 = vst.msk [vmem:[#allocation2 + $0x8] sm:$0xff] %vm19_vm0, %v137_v0  ;;  %v135_v2 = vld [vmem:[%s184_s1 + $0x8] sm:$0xff]  }
   0x2   :  { %125 = vmatpush3.bf16.msra.mxu0 %v134_v1  ;;  %v136_v3 = vld [vmem:[%s185_s0] sm:$0xff]  }
   0x3   :  { %126 = vmatprep.subr.bf16.mxu0 %v137_v0  ;;  %v120_v12 = vld [vmem:[%s186_s2] ss:$0 sm:$0xff] }
   0x6   :  { %127 = vmatpush3.bf16.msra.mxu0 %v135_v2 }
   0x8   :  { %v22_v4 = vld [vmem:[#allocation2] sm:$0xff]  ;;  %v23_v6 = vld [vmem:[#allocation2 + $0x8] sm:$0xff] }
   0x9   :  { %129 = vmatmul.mubr.msk.bf16.vlgmr.msra.gmra.mrb[0].mxu0 %vm19_vm0, %v136_v3 }
  0xdc   :  { %v85_v5 = vpop.f32.mrb[0].mxu0 }
  0xdd   :  { %v92_v7 = vadd.f32 %v85_v5, %v22_v4  ;;  %v130_v8 = vpop.f32.mrb[1].mxu0 }
  0xde   :  { %v88_v9 = vpop.f32.mrb[2].mxu0 }
  0xdf   :  { %94 = vst.msk [vmem:[#allocation2] sm:$0xff] %vm19_vm0, %v92_v7  ;;  %v93_v10 = vadd.f32 %v88_v9, %v23_v6  ;;  %v131_v11 = vpop.f32.mrb[3].mxu0 }
  0xe1   :  { %95 = vst.msk [vmem:[#allocation2 + $0x8] sm:$0xff] %vm19_vm0, %v93_v10 }
  0xe6   :  { %v99_v13 = vld [vmem:[#allocation2] sm:$0xff] }
  0xe7   :  { %v108_v14 = vadd.f32 %v120_v12, %v99_v13 }
  0xe8   :  { %v100_v15 = vld [vmem:[#allocation2 + $0x8] sm:$0xff] }
  0xe9   :  { %110 = vst.msk [vmem:[%s187_s3] sm:$0xff] %vm19_vm0, %v108_v14  ;;  %v109_v16 = vadd.f32 %v120_v12, %v100_v15 }
  0xeb   :  { %111 = vst.msk [vmem:[%s187_s3 + $0x8] sm:$0xff] %vm19_vm0, %v109_v16 }

// kernel: transformer_translator_forward.37
= control target key start
LH: loop header
LB: loop body
LE: loop exit
PB: predicated region body
PF: predicated region fallthrough
CT: control target
= control target key end

     0   :  { %vm19_vm0 = vcmask 785408   ;;  %v138_v0 = vmov 0.0   ;;  %vm139_vm1 = vmmov 0   ;;  %vm47_vm2 = vcmask 261120   ;;  %s184_s1 = inlined_call_operand.vmem [shape: bf16[32,96], index: 1, kind: input, shape index: {}]   ;;  %s185_s0 = inlined_call_operand.vmem [shape: bf16[16,32], index: 0, kind: input, shape index: {}]   ;;  %s186_s2 = inlined_call_operand.vmem [shape: f32[1,96], index: 2, kind: input, shape index: {}]   ;;  %s187_s3 = inlined_call_operand.vmem [shape: f32[16,96], index: 3, kind: output, shape index: {}]  }
   0x1   :  { %125 = vmatprep.subr.bf16.mxu0 %v138_v0  ;;  %v135_v1 = vld [vmem:[%s184_s1] sm:$0xff]   ;;  %129 = vmatprep.mubr.msk.bf16.mxu0 %vm139_vm1, %v138_v0  ;;  %20 = vst.msk [vmem:[#allocation2] sm:$0xff] %vm19_vm0, %v138_v0  ;;  %21 = vst.msk [vmem:[#allocation2 + $0x8] sm:$0xff] %vm19_vm0, %v138_v0  ;;  %v136_v2 = vld [vmem:[%s184_s1 + $0x8] sm:$0xff]  }
   0x2   :  { %126 = vmatpush3.bf16.msra.mxu0 %v135_v1  ;;  %v137_v3 = vld [vmem:[%s185_s0] sm:$0xff]  }
   0x3   :  { %127 = vmatprep.subr.bf16.mxu0 %v138_v0  ;;  %v121_v12 = vld [vmem:[%s186_s2] ss:$0 sm:$0xff] }
   0x6   :  { %128 = vmatpush3.bf16.msra.mxu0 %v136_v2 }
   0x8   :  { %v22_v4 = vld [vmem:[#allocation2] sm:$0xff]  ;;  %v23_v6 = vld [vmem:[#allocation2 + $0x8] sm:$0xff] }
   0x9   :  { %130 = vmatmul.mubr.msk.bf16.vlgmr.msra.gmra.mrb[0].mxu0 %vm47_vm2, %v137_v3 }
  0xdc   :  { %v85_v5 = vpop.f32.mrb[0].mxu0 }
  0xdd   :  { %v92_v7 = vadd.f32 %v85_v5, %v22_v4  ;;  %v131_v8 = vpop.f32.mrb[1].mxu0 }
  0xde   :  { %v88_v9 = vpop.f32.mrb[2].mxu0 }
  0xdf   :  { %95 = vst.msk [vmem:[#allocation2] sm:$0xff] %vm19_vm0, %v92_v7  ;;  %v93_v10 = vadd.f32 %v88_v9, %v23_v6  ;;  %v132_v11 = vpop.f32.mrb[3].mxu0 }
  0xe1   :  { %96 = vst.msk [vmem:[#allocation2 + $0x8] sm:$0xff] %vm19_vm0, %v93_v10 }
  0xe6   :  { %v100_v13 = vld [vmem:[#allocation2] sm:$0xff] }
  0xe7   :  { %v109_v14 = vadd.f32 %v121_v12, %v100_v13 }
  0xe8   :  { %v101_v15 = vld [vmem:[#allocation2 + $0x8] sm:$0xff] }
  0xe9   :  { %111 = vst.msk [vmem:[%s187_s3] sm:$0xff] %vm19_vm0, %v109_v14  ;;  %v110_v16 = vadd.f32 %v121_v12, %v101_v15 }
  0xeb   :  { %112 = vst.msk [vmem:[%s187_s3 + $0x8] sm:$0xff] %vm19_vm0, %v110_v16 }

// kernel: transformer_translator_forward.38
= control target key start
LH: loop header
LB: loop body
LE: loop exit
PB: predicated region body
PF: predicated region fallthrough
CT: control target
= control target key end

     0   :  { %s966_s15 = smov 0   ;;  %s1077_s0 = inlined_call_operand.vmem [shape: bf16[2,8,32], index: 0, kind: input, shape index: {}]   ;;  %s1078_s1 = inlined_call_operand.vmem [shape: bf16[2,8,32], index: 1, kind: input, shape index: {}]   ;;  %s1079_s2 = inlined_call_operand.vmem [shape: bf16[2,8,32], index: 2, kind: input, shape index: {}]   ;;  %s1080_s3 = inlined_call_operand.vmem [shape: f32[2,8,8], index: 3, kind: input, shape index: {}]   ;;  %s1081_s4 = inlined_call_operand.vmem [shape: f32[2,8,32], index: 4, kind: output, shape index: {}]  }
   0x1 LB: > { %s804_s16 = sadd.s32 4294967295, %s931_s15   ;;  %p808_p0 = scmp.ge.s32.totalorder %s931_s15, 1  ;;  %s931_s15 = sphi %s966_s15, %s14_s15  }
   0x2   : > { %p188_p1 = scmp.lt.s32.totalorder %s931_s15, 3 }
   0x4   : > { %p189_p2 = pnand %p808_p0, %p188_p1 }
   0x5   : > { %p224_p3 = scmp.lt.s32.totalorder (!%p189_p2), %s804_s16, 1  ;;  %v933_v0 = vmov (!%p189_p2), 0.0   ;;  %vm934_vm0 = vmmov (!%p189_p2), 0   ;;  %vm251_vm1 = vcmask (!%p189_p2), 64512   ;;  %s935_s24 = smov (!%p189_p2), 120   ;;  %vm311_vm2 = vcmask (!%p189_p2), 1043456  }
   0x6   : > { %192 = sbr.rel (%p189_p2) target bundleno = 1165 (0x48d), region = 36  ;;  %843 = vmatprep.subr.bf16.mxu0 (!%p189_p2), %v933_v0  ;;  %845 = vmatprep.mubr.msk.bf16.mxu0 (!%p189_p2), %vm934_vm0, %v933_v0  ;;  %s936_s25 = smov (!%p189_p2), 112   ;;  %vm709_vm3 = vcmask (!%p189_p2), 130048   ;;  %vm711_vm4 = vcmask (!%p189_p2), 195584   ;;  %vm713_vm5 = vcmask (!%p189_p2), 261120  }
   0x7   : > { %849 = vmatprep.subr.bf16.mxu1 (!%p189_p2), %v933_v0  ;;  %851 = vmatprep.mubr.msk.bf16.mxu1 (!%p189_p2), %vm934_vm0, %v933_v0  ;;  %s937_s26 = smov (!%p189_p2), 104   ;;  %s938_s8 = smov (!%p189_p2), 8  }
   0x8   : > { %s939_s9 = smov (!%p189_p2), 16   ;;  %s940_s10 = smov (!%p189_p2), 24  }
   0xd   : > { %s1083_s16 = smov (!%p224_p3, %s804_s16), 1 }
   0xe   : > { %s983_s17 = sshll.u32 %s1083_s16, 2  ;;  %s812_s27 = sshll.u32 %s1083_s16, 3 }
   0xf   : > { %s227_s20 = scalar_lea.vmem %s1077_s0, %s983_s17  ;;  %s231_s23 = scalar_lea.vmem %s1078_s1, %s983_s17 }
  0x10   : > { %v248_v1 = vld [vmem:[%s231_s23] sm:$0xf]  ;;  %s239_s30 = scalar_lea.vmem %s1080_s3, %s812_s27  ;;  %s235_s7 = scalar_lea.vmem %s1079_s2, %s983_s17 }
  0x11   : > { %v256_v2 = vsel %vm251_vm1, %v248_v1, 0  ;;  %v246_v3 = vld [vmem:[%s227_s20] sm:$0xf]  ;;  %v817_v6 = vcombine.low %v248_v1, %v248_v1  ;;  %s243_s13 = scalar_lea.vmem %s1081_s4, %s812_s27 }
  0x12   : > { %844 = vmatpush3.bf16.xpose.msra.mxu0 %v256_v2  ;;  %v247_v4 = vmul.bf16 1052065461, %v246_v3  ;;  %v1009_v7 = vld [vmem:[%s239_s30] sm:$0xff] }
  0x13   : > { %861 = vmatprep.subr.bf16.mxu0 %v933_v0  ;;  %v249_v14 = vld [vmem:[%s235_s7] sm:$0xf] }
  0x14   : > { %v816_v5 = vcombine.low %v247_v4, %v247_v4  ;;  %v313_v15 = vsel %vm311_vm2, %v249_v14, 0  ;;  %v819_v47 = vcombine.low %v249_v14, %v249_v14 }
  0x15   : > { %850 = vmatpush3.bf16.msra.mxu1 %v313_v15 }
  0x16   : > { %360 = vrot.lane.b32.xlu1 %v816_v5, %s935_s24  ;;  %855 = vmatprep.subr.bf16.mxu1 %v933_v0 }
  0x19   : > { %846 = vmatmul.mubr.msk.bf16.vlgmr.msra.gmra.mrb[0].mxu0 %vm251_vm1, %v247_v4 }
  0x1a   : > { %863 = vmatprep.mubr.msk.bf16.mxu0 %vm934_vm0, %v933_v0  ;;  %478 = vrot.lane.b32.xlu1 %v817_v6, %s936_s25 }
  0x1e   : > { %476 = vrot.lane.b32.xlu1 %v816_v5, %s936_s25 }
  0x22   : > { %588 = vrot.lane.b32.xlu1 %v817_v6, %s937_s26 }
  0x26   : > { %586 = vrot.lane.b32.xlu1 %v816_v5, %s937_s26 }
  0x88   : > { %v361_v21 = vpop.permute.xlu1 %360 }
  0x8c   : > { %v479_v24 = vpop.permute.xlu1 %478 }
  0x8d   : > { %v484_v25 = vsel %vm251_vm1, %v479_v24, 0 }
  0x90   : > { %v477_v26 = vpop.permute.xlu1 %476 }
  0x94   : > { %v589_v27 = vpop.permute.xlu1 %588 }
  0x95   : > { %v594_v28 = vsel %vm251_vm1, %v589_v27, 0 }
  0x98   : > { %v587_v29 = vpop.permute.xlu1 %586 }
  0xec   : > { %v292_v8 = vpop.f32.mrb[0].mxu0 }
  0xed   : > { %v293_v9 = vadd.f32 %v292_v8, %v1009_v7  ;;  %v847_v10 = vpop.f32.mrb[1].mxu0 }
  0xee   : > { %v295_v11 = vpop.f32.mrb[2].mxu0 }
  0xef   : > { %v848_v12 = vpop.f32.mrb[3].mxu0  ;;  %v298_v13 = vsel %vm251_vm1, %v293_v9, -inf }
  0xf0   : > { %299 = vmax.xlane.f32.xlu0 %v298_v13 }
 0x106   : > { %365 = vrot.lane.b32.xlu0 %v817_v6, %s935_s24 }
 0x17d   : > { %v300_v16 = vpop.xlane.xlu0 %299 }
 0x17e   : > { %v301_v17 = vsub.f32 %v293_v9, %v300_v16 }
 0x180   : > { %v302_v18 = vmul.f32 1.442695, %v301_v17 }
 0x181   : > { %v366_v19 = vpop.permute.xlu0 %365 }
 0x182   : > { %909 = vpow2.f32 %v302_v18  ;;  %v371_v22 = vsel %vm251_vm1, %v366_v19, 0 }
 0x18c   : > { %v1020_v20 = vpop.eup %909 }
 0x18d   : > { %v307_v23 = vpack.c.bf16 %v1020_v20, %v1020_v20  ;;  %v304_v14 = vsel %vm251_vm1, %v1020_v20, 0.0 }
 0x18f   : > { %852 = vmatmul.mubr.msk.bf16.vlgmr.msra.gmra.mrb[0].mxu1 %vm251_vm1, %v307_v23 }
 0x190   : > { %856 = vmatpush3.bf16.xpose.msra.mxu1 %v371_v22  ;;  %857 = vmatprep.mubr.msk.bf16.mxu1 %vm934_vm0, %v933_v0 }
 0x191   : > { %867 = vmatprep.subr.bf16.mxu1 %v933_v0 }
 0x197   : > { %858 = vmatmul.mubr.msk.bf16.vlgmr.msra.gmra.mrb[4].mxu1 %vm251_vm1, %v361_v21 }
 0x198   : > { %868 = vmatpush3.bf16.xpose.msra.mxu1 %v484_v25  ;;  %869 = vmatprep.mubr.msk.bf16.mxu1 %vm934_vm0, %v933_v0 }
 0x199   : > { %879 = vmatprep.subr.bf16.mxu1 %v933_v0 }
 0x19f   : > { %870 = vmatmul.mubr.msk.bf16.vlgmr.msra.gmra.mrb[8].mxu1 %vm251_vm1, %v477_v26 }
 0x1a0   : > { %880 = vmatpush3.bf16.xpose.msra.mxu1 %v594_v28  ;;  %881 = vmatprep.mubr.msk.bf16.mxu1 %vm934_vm0, %v933_v0 }
 0x1a7   : > { %882 = vmatmul.mubr.msk.bf16.vlgmr.msra.gmra.mrb[12].mxu1 %vm251_vm1, %v587_v29 }
 0x262   : > { %v1039_v30 = vpop.f32.mrb[0].mxu1 }
 0x263   : > { %v853_v31 = vpop.f32.mrb[1].mxu1 }
 0x264   : > { %v352_v32 = vpop.f32.mrb[2].mxu1 }
 0x265   : > { %v854_v33 = vpop.f32.mrb[3].mxu1 }
 0x26a   : > { %v407_v34 = vpop.f32.mrb[4].mxu1 }
 0x26b   : > { %v408_v35 = vadd.f32 %v407_v34, %v1009_v7  ;;  %v859_v36 = vpop.f32.mrb[5].mxu1 }
 0x26c   : > { %v410_v37 = vpop.f32.mrb[6].mxu1 }
 0x26d   : > { %v860_v38 = vpop.f32.mrb[7].mxu1  ;;  %v413_v39 = vsel %vm251_vm1, %v408_v35, -inf }
 0x26e   : > { %414 = vmax.xlane.f32.xlu1 %v413_v39 }
 0x272   : > { %v520_v40 = vpop.f32.mrb[8].mxu1 }
 0x273   : > { %v521_v41 = vadd.f32 %v520_v40, %v1009_v7  ;;  %v871_v42 = vpop.f32.mrb[9].mxu1 }
 0x274   : > { %v523_v43 = vpop.f32.mrb[10].mxu1 }
 0x275   : > { %v526_v44 = vsel %vm251_vm1, %v521_v41, -inf  ;;  %v872_v45 = vpop.f32.mrb[11].mxu1 }
 0x276   : > { %527 = vmax.xlane.f32.xlu0 %v526_v44 }
 0x27a   : > { %v630_v46 = vpop.f32.mrb[12].mxu1 }
 0x27b   : > { %v883_v48 = vpop.f32.mrb[13].mxu1  ;;  %v631_v51 = vadd.f32 %v630_v46, %v1009_v7 }
 0x27c   : > { %v633_v49 = vpop.f32.mrb[14].mxu1 }
 0x27d   : > { %v884_v50 = vpop.f32.mrb[15].mxu1  ;;  %v636_v52 = vsel %vm251_vm1, %v631_v51, -inf }
 0x27f   : > { %536 = vrot.lane.b32.xlu1 %v819_v47, %s936_s25 }
 0x28c   : > { %426 = vrot.lane.b32.xlu0 %v819_v47, %s935_s24 }
 0x2a3   : > { %637 = vmax.xlane.f32.xlu1 %v636_v52 }
 0x2b4   : > { %646 = vrot.lane.b32.xlu1 %v819_v47, %s937_s26 }
 0x2fb   : > { %v415_v53 = vpop.xlane.xlu1 %414 }
 0x2fc   : > { %v416_v54 = vsub.f32 %v408_v35, %v415_v53 }
 0x2fe   : > { %v417_v55 = vmul.f32 1.442695, %v416_v54 }
 0x2ff   : > { %v537_v62 = vpop.permute.xlu1 %536 }
 0x300   : > { %911 = vpow2.f32 %v417_v55  ;;  %v542_v2 = vsel %vm311_vm2, %v537_v62, 0 }
 0x303   : > { %v528_v56 = vpop.xlane.xlu0 %527 }
 0x304   : > { %v529_v57 = vsub.f32 %v521_v41, %v528_v56 }
 0x306   : > { %v530_v58 = vmul.f32 1.442695, %v529_v57 }
 0x307   : > { %v427_v59 = vpop.permute.xlu0 %426 }
 0x308   : > { %913 = vpow2.f32 %v530_v58  ;;  %v432_v60 = vsel %vm311_vm2, %v427_v59, 0 }
 0x309   : > { %862 = vmatpush3.bf16.msra.mxu0 %v432_v60 }
 0x30a   : > { %v912_v61 = vpop.eup %911  ;;  %873 = vmatprep.subr.bf16.mxu0 %v933_v0 }
 0x30b   : > { %v419_v63 = vsel %vm251_vm1, %v912_v61, 0.0  ;;  %v422_v1 = vpack.c.bf16 %v912_v61, %v912_v61 }
 0x30c   : > { %420 = vadd.xlane.f32.xlu0 %v419_v63 }
 0x30d   : > { %864 = vmatmul.mubr.msk.bf16.vlgmr.msra.gmra.mrb[4].mxu0 %vm251_vm1, %v422_v1 }
 0x30e   : > { %874 = vmatpush3.bf16.msra.mxu0 %v542_v2  ;;  %875 = vmatprep.mubr.msk.bf16.mxu0 %vm934_vm0, %v933_v0 }
 0x30f   : > { %885 = vmatprep.subr.bf16.mxu0 %v933_v0 }
 0x312   : > { %v914_v3 = vpop.eup %913 }
 0x313   : > { %v532_v4 = vsel %vm251_vm1, %v914_v3, 0.0  ;;  %v535_v5 = vpack.c.bf16 %v914_v3, %v914_v3 }
 0x314   : > { %533 = vadd.xlane.f32.xlu1 %v532_v4 }
 0x315   : > { %876 = vmatmul.mubr.msk.bf16.vlgmr.msra.gmra.mrb[8].mxu0 %vm251_vm1, %v535_v5 }
 0x316   : > { %887 = vmatprep.mubr.msk.bf16.mxu0 %vm934_vm0, %v933_v0 }
 0x330   : > { %v638_v6 = vpop.xlane.xlu1 %637 }
 0x331   : > { %v639_v7 = vsub.f32 %v631_v51, %v638_v6 }
 0x333   : > { %v640_v8 = vmul.f32 1.442695, %v639_v7 }
 0x334   : > { %v647_v9 = vpop.permute.xlu1 %646 }
 0x335   : > { %915 = vpow2.f32 %v640_v8  ;;  %v652_v10 = vsel %vm311_vm2, %v647_v9, 0 }
 0x336   : > { %886 = vmatpush3.bf16.msra.mxu0 %v652_v10 }
 0x33f   : > { %v916_v11 = vpop.eup %915 }
 0x340   : > { %v642_v12 = vsel %vm251_vm1, %v916_v11, 0.0  ;;  %v645_v13 = vpack.c.bf16 %v916_v11, %v916_v11 }
 0x341   : > { %643 = vadd.xlane.f32.xlu0 %v642_v12 }
 0x342   : > { %888 = vmatmul.mubr.msk.bf16.vlgmr.msra.gmra.mrb[12].mxu0 %vm251_vm1, %v645_v13 }
 0x345   : > { %305 = vadd.xlane.f32.xlu0 %v304_v14 }
 0x399   : > { %v421_v0 = vpop.xlane.xlu0 %420 }
 0x39a   : > { %917 = vrcp.f32 %v421_v0 }
 0x3a1   : > { %v534_v15 = vpop.xlane.xlu1 %533 }
 0x3a2   : > { %919 = vrcp.f32 %v534_v15 }
 0x3a4   : > { %v918_v16 = vpop.eup %917 }
 0x3ac   : > { %v920_v23 = vpop.eup %919 }
 0x3ce   : > { %v644_v28 = vpop.xlane.xlu0 %643 }
 0x3cf   : > { %921 = vrcp.f32 %v644_v28 }
 0x3d2   : > { %v306_v36 = vpop.xlane.xlu0 %305 }
 0x3d3   : > { %923 = vrcp.f32 %v306_v36 }
 0x3d9   : > { %v922_v29 = vpop.eup %921 }
 0x3dd   : > { %v924_v37 = vpop.eup %923 }
 0x3de   : > { %v356_v39 = vmul.f32 %v924_v37, %v1039_v30 }
 0x3e0   : > { %v468_v17 = vpop.f32.mrb[4].mxu0 }
 0x3e1   : > { %v475_v18 = vmul.f32 %v918_v16, %v468_v17  ;;  %v865_v19 = vpop.f32.mrb[5].mxu0 }
 0x3e2   : > { %v471_v21 = vpop.f32.mrb[6].mxu0 }
 0x3e3   : > { %697 = vrot.lane.b32.xlu1 %v475_v18, %s938_s8  ;;  %v866_v22 = vpop.f32.mrb[7].mxu0 }
 0x3e8   : > { %v578_v24 = vpop.f32.mrb[8].mxu0 }
 0x3e9   : > { %v585_v25 = vmul.f32 %v920_v23, %v578_v24  ;;  %v877_v26 = vpop.f32.mrb[9].mxu0 }
 0x3ea   : > { %v581_v27 = vpop.f32.mrb[10].mxu0 }
 0x3eb   : > { %701 = vrot.lane.b32.xlu0 %v585_v25, %s939_s9  ;;  %v878_v20 = vpop.f32.mrb[11].mxu0 }
 0x415   : > { %v688_v31 = vpop.f32.mrb[12].mxu0 }
 0x416   : > { %v695_v32 = vmul.f32 %v922_v29, %v688_v31  ;;  %v889_v33 = vpop.f32.mrb[13].mxu0 }
 0x417   : > { %v691_v34 = vpop.f32.mrb[14].mxu0 }
 0x418   : > { %705 = vrot.lane.b32.xlu1 %v695_v32, %s940_s10  ;;  %v890_v35 = vpop.f32.mrb[15].mxu0 }
 0x455   : > { %v698_v38 = vpop.permute.xlu1 %697 }
 0x456   : > { %v708_v41 = vsel %vm251_vm1, %v356_v39, %v698_v38 }
 0x45d   : > { %v702_v40 = vpop.permute.xlu0 %701 }
 0x45e   : > { %v710_v42 = vsel %vm709_vm3, %v708_v41, %v702_v40 }
 0x48a   : > { %v706_v43 = vpop.permute.xlu1 %705 }
 0x48b   : > { %v712_v44 = vsel %vm711_vm4, %v710_v42, %v706_v43 }
 0x48c   : > { %714 = vst.msk [vmem:[%s243_s13] sm:$0xff] %vm713_vm5, %v712_v44 }
 0x48d PF: > { %s14_s15 = sadd.s32 1, %s931_s15  }
 0x48e   : > { %p11_p4 = scmp.ge.s32.totalorder %s14_s15, 4  }
 0x490   :  { %13 = sbr.rel (!%p11_p4) target bundleno = 1 (0x1), region = 75 }

// kernel: transformer_translator_forward.55
= control target key start
LH: loop header
LB: loop body
LE: loop exit
PB: predicated region body
PF: predicated region fallthrough
CT: control target
= control target key end

     0   :  { %vm19_vm0 = vcmask 523264   ;;  %v138_v0 = vmov 0.0   ;;  %vm139_vm1 = vmmov 0   ;;  %vm47_vm2 = vcmask 261120   ;;  %s184_s1 = inlined_call_operand.vmem [shape: bf16[32,64], index: 1, kind: input, shape index: {}]   ;;  %s185_s0 = inlined_call_operand.vmem [shape: bf16[16,32], index: 0, kind: input, shape index: {}]   ;;  %s186_s2 = inlined_call_operand.vmem [shape: f32[1,64], index: 2, kind: input, shape index: {}]   ;;  %s187_s3 = inlined_call_operand.vmem [shape: f32[16,64], index: 3, kind: output, shape index: {}]  }
   0x1   :  { %125 = vmatprep.subr.bf16.mxu0 %v138_v0  ;;  %v135_v1 = vld [vmem:[%s184_s1] sm:$0xff]   ;;  %129 = vmatprep.mubr.msk.bf16.mxu0 %vm139_vm1, %v138_v0  ;;  %20 = vst.msk [vmem:[#allocation2] sm:$0xff] %vm19_vm0, %v138_v0  ;;  %21 = vst.msk [vmem:[#allocation2 + $0x8] sm:$0xff] %vm19_vm0, %v138_v0  ;;  %v136_v2 = vld [vmem:[%s184_s1 + $0x8] sm:$0xff]  }
   0x2   :  { %126 = vmatpush3.bf16.msra.mxu0 %v135_v1  ;;  %v137_v3 = vld [vmem:[%s185_s0] sm:$0xff]  }
   0x3   :  { %127 = vmatprep.subr.bf16.mxu0 %v138_v0  ;;  %v121_v12 = vld [vmem:[%s186_s2] ss:$0 sm:$0xff] }
   0x6   :  { %128 = vmatpush3.bf16.msra.mxu0 %v136_v2 }
   0x8   :  { %v22_v4 = vld [vmem:[#allocation2] sm:$0xff]  ;;  %v23_v6 = vld [vmem:[#allocation2 + $0x8] sm:$0xff] }
   0x9   :  { %130 = vmatmul.mubr.msk.bf16.vlgmr.msra.gmra.mrb[0].mxu0 %vm47_vm2, %v137_v3 }
  0xdc   :  { %v85_v5 = vpop.f32.mrb[0].mxu0 }
  0xdd   :  { %v92_v7 = vadd.f32 %v85_v5, %v22_v4  ;;  %v131_v8 = vpop.f32.mrb[1].mxu0 }
  0xde   :  { %v88_v9 = vpop.f32.mrb[2].mxu0 }
  0xdf   :  { %95 = vst.msk [vmem:[#allocation2] sm:$0xff] %vm19_vm0, %v92_v7  ;;  %v93_v10 = vadd.f32 %v88_v9, %v23_v6  ;;  %v132_v11 = vpop.f32.mrb[3].mxu0 }
  0xe1   :  { %96 = vst.msk [vmem:[#allocation2 + $0x8] sm:$0xff] %vm19_vm0, %v93_v10 }
  0xe6   :  { %v100_v13 = vld [vmem:[#allocation2] sm:$0xff] }
  0xe7   :  { %v109_v14 = vadd.f32 %v121_v12, %v100_v13 }
  0xe8   :  { %v101_v15 = vld [vmem:[#allocation2 + $0x8] sm:$0xff] }
  0xe9   :  { %111 = vst.msk [vmem:[%s187_s3] sm:$0xff] %vm19_vm0, %v109_v14  ;;  %v110_v16 = vadd.f32 %v121_v12, %v101_v15 }
  0xeb   :  { %112 = vst.msk [vmem:[%s187_s3 + $0x8] sm:$0xff] %vm19_vm0, %v110_v16 }

// kernel: transformer_translator_forward.49
= control target key start
LH: loop header
LB: loop body
LE: loop exit
PB: predicated region body
PF: predicated region fallthrough
CT: control target
= control target key end

     0   :  { %vm16_vm0 = vcmask 261120   ;;  %s118_s0 = inlined_call_operand.vmem [shape: f32[16,32], index: 0, kind: input, shape index: {}]   ;;  %s119_s1 = inlined_call_operand.vmem [shape: f32[1,32], index: 1, kind: input, shape index: {}]   ;;  %s120_s2 = inlined_call_operand.vmem [shape: f32[1,32], index: 2, kind: input, shape index: {}]   ;;  %s121_s3 = inlined_call_operand.vmem [shape: f32[16,32], index: 3, kind: output, shape index: {}]  }
   0x1   :  { %v14_v0 = vld [vmem:[%s118_s0] sm:$0xff]  ;;  %v15_v1 = vld [vmem:[%s118_s0 + $0x8] sm:$0xff] }
   0x2   :  { %v17_v2 = vsel %vm16_vm0, %v14_v0, 0.0  ;;  %v20_v3 = vsel %vm16_vm0, %v15_v1, 0.0  ;;  %v68_v21 = vld [vmem:[%s119_s1] ss:$0 sm:$0xff] }
   0x3   :  { %18 = vadd.xlane.f32.xlu0 %v17_v2  ;;  %v69_v23 = vld [vmem:[%s120_s2] ss:$0 sm:$0xff] }
   0x7   :  { %21 = vadd.xlane.f32.xlu0 %v20_v3 }
  0x90   :  { %v19_v4 = vpop.xlane.xlu0 %18 }
  0x91   :  { %v24_v5 = vmul.f32 0.03125, %v19_v4 }
  0x93   :  { %v26_v6 = vsub.f32 %v14_v0, %v24_v5 }
  0x94   :  { %v22_v7 = vpop.xlane.xlu0 %21 }
  0x95   :  { %v25_v8 = vmul.f32 0.03125, %v22_v7  ;;  %v28_v9 = vmul.f32 %v26_v6, %v26_v6 }
  0x97   :  { %v27_v10 = vsub.f32 %v15_v1, %v25_v8  ;;  %v30_v11 = vsel %vm16_vm0, %v28_v9, 0.0 }
  0x98   :  { %31 = vadd.xlane.f32.xlu1 %v30_v11 }
  0x99   :  { %v29_v12 = vmul.f32 %v27_v10, %v27_v10 }
  0x9b   :  { %v33_v13 = vsel %vm16_vm0, %v29_v12, 0.0 }
  0x9c   :  { %34 = vadd.xlane.f32.xlu1 %v33_v13 }
 0x125   :  { %v32_v14 = vpop.xlane.xlu1 %31 }
 0x126   :  { %v36_v15 = vmul.f32 0.03125, %v32_v14 }
 0x128   :  { %v38_v16 = vadd.f32 1e-05, %v36_v15 }
 0x129   :  { %v35_v17 = vpop.xlane.xlu1 %34 }
 0x12a   :  { %70 = vrsqrt.f32 %v38_v16  ;;  %v37_v18 = vmul.f32 0.03125, %v35_v17 }
 0x12c   :  { %v39_v19 = vadd.f32 1e-05, %v37_v18 }
 0x12e   :  { %72 = vrsqrt.f32 %v39_v19 }
 0x134   :  { %v71_v20 = vpop.eup %70 }
 0x135   :  { %v42_v22 = vmul.f32 %v71_v20, %v26_v6 }
 0x137   :  { %v51_v24 = vmul.f32 %v68_v21, %v42_v22 }
 0x138   :  { %v73_v25 = vpop.eup %72 }
 0x139   :  { %v60_v26 = vadd.f32 %v69_v23, %v51_v24  ;;  %v43_v27 = vmul.f32 %v73_v25, %v27_v10 }
 0x13b   :  { %62 = vst.msk [vmem:[%s121_s3] sm:$0xff] %vm16_vm0, %v60_v26  ;;  %v52_v28 = vmul.f32 %v68_v21, %v43_v27 }
 0x13d   :  { %v61_v29 = vadd.f32 %v69_v23, %v52_v28 }
 0x13f   :  { %63 = vst.msk [vmem:[%s121_s3 + $0x8] sm:$0xff] %vm16_vm0, %v61_v29 }

// kernel: transformer_translator_forward.41
= control target key start
LH: loop header
LB: loop body
LE: loop exit
PB: predicated region body
PF: predicated region fallthrough
CT: control target
= control target key end

     0   :  { %v237_v0 = vmov 0.0   ;;  %vm238_vm0 = vmmov 0   ;;  %vm51_vm1 = vcmask 261120   ;;  %vm138_vm2 = vcmask 523264   ;;  %s305_s1 = inlined_call_operand.vmem [shape: bf16[32,64], index: 1, kind: input, shape index: {}]   ;;  %s306_s3 = inlined_call_operand.vmem [shape: bf16[64,32], index: 3, kind: input, shape index: {}]   ;;  %s307_s0 = inlined_call_operand.vmem [shape: bf16[16,32], index: 0, kind: input, shape index: {}]   ;;  %s308_s2 = inlined_call_operand.vmem [shape: f32[1,64], index: 2, kind: input, shape index: {}]   ;;  %s309_s4 = inlined_call_operand.vmem [shape: f32[1,32], index: 4, kind: input, shape index: {}]   ;;  %s310_s5 = inlined_call_operand.vmem [shape: f32[16,32], index: 5, kind: output, shape index: {}]  }
   0x1   :  { %208 = vmatprep.subr.bf16.mxu0 %v237_v0  ;;  %v230_v1 = vld [vmem:[%s305_s1] sm:$0xff]   ;;  %212 = vmatprep.mubr.msk.bf16.mxu0 %vm238_vm0, %v237_v0  ;;  %v231_v2 = vld [vmem:[%s305_s1 + $0x8] sm:$0xff]   ;;  %v235_v6 = vld [vmem:[%s306_s3 + $0x10] sm:$0xff]  }
   0x2   :  { %216 = vmatprep.subr.bf16.mxu1 %v237_v0  ;;  %224 = vmatprep.mubr.msk.bf16.mxu1 %vm238_vm0, %v237_v0  ;;  %v233_v3 = vld [vmem:[%s306_s3] sm:$0xff]   ;;  %v234_v5 = vld [vmem:[%s306_s3 + $0x8] sm:$0xff]   ;;  %v236_v7 = vld [vmem:[%s306_s3 + $0x18] sm:$0xff]  }
   0x3   :  { %209 = vmatpush3.bf16.msra.mxu0 %v230_v1  ;;  %v232_v4 = vld [vmem:[%s307_s0] sm:$0xff]   ;;  %217 = vmatpush3.bf16.msra.mxu1 %v233_v3 }
   0x4   :  { %210 = vmatprep.subr.bf16.mxu0 %v237_v0  ;;  %218 = vmatprep.subr.bf16.mxu1 %v237_v0  ;;  %v189_v8 = vld [vmem:[%s308_s2] ss:$0 sm:$0xff] }
   0x5   :  { %v194_v18 = vld [vmem:[%s309_s4] ss:$0 sm:$0xff] }
   0x7   :  { %211 = vmatpush3.bf16.msra.mxu0 %v231_v2  ;;  %219 = vmatpush3.bf16.msra.mxu1 %v234_v5 }
   0x8   :  { %220 = vmatprep.subr.bf16.mxu1 %v237_v0 }
   0xa   :  { %213 = vmatmul.mubr.msk.bf16.vlgmr.msra.gmra.mrb[0].mxu0 %vm51_vm1, %v232_v4 }
   0xb   :  { %221 = vmatpush3.bf16.msra.mxu1 %v235_v6 }
   0xc   :  { %222 = vmatprep.subr.bf16.mxu1 %v237_v0 }
   0xf   :  { %223 = vmatpush3.bf16.msra.mxu1 %v236_v7 }
  0xdd   :  { %v89_v9 = vpop.f32.mrb[0].mxu0 }
  0xde   :  { %v90_v10 = vadd.f32 %v189_v8, %v89_v9  ;;  %v214_v11 = vpop.f32.mrb[1].mxu0 }
  0xdf   :  { %v92_v12 = vpop.f32.mrb[2].mxu0 }
  0xe0   :  { %v93_v13 = vadd.f32 %v189_v8, %v92_v12  ;;  %v215_v14 = vpop.f32.mrb[3].mxu0  ;;  %v96_v15 = vmax.f32 %v90_v10, 0.0 }
  0xe2   :  { %v97_v16 = vmax.f32 %v93_v13, 0.0 }
  0xe4   :  { %v98_v17 = vpack.c.bf16 %v97_v16, %v96_v15 }
  0xe6   :  { %225 = vmatmul.mubr.msk.bf16.vlgmr.msra.gmra.mrb[0].mxu1 %vm138_vm2, %v98_v17 }
 0x1b9   :  { %v176_v19 = vpop.f32.mrb[0].mxu1 }
 0x1ba   :  { %v177_v20 = vadd.f32 %v194_v18, %v176_v19  ;;  %v226_v21 = vpop.f32.mrb[1].mxu1 }
 0x1bb   :  { %v179_v22 = vpop.f32.mrb[2].mxu1 }
 0x1bc   :  { %183 = vst.msk [vmem:[%s310_s5] sm:$0xff] %vm51_vm1, %v177_v20  ;;  %v180_v23 = vadd.f32 %v194_v18, %v179_v22  ;;  %v227_v24 = vpop.f32.mrb[3].mxu1 }
 0x1be   :  { %184 = vst.msk [vmem:[%s310_s5 + $0x8] sm:$0xff] %vm51_vm1, %v180_v23 }

// kernel: transformer_translator_forward.73
= control target key start
LH: loop header
LB: loop body
LE: loop exit
PB: predicated region body
PF: predicated region fallthrough
CT: control target
= control target key end

     0   :  { %v178_v1 = vmov 0.0   ;;  %vm179_vm0 = vmmov 0   ;;  %vm20_vm1 = vcmask 490496   ;;  %s233_s0 = inlined_call_operand.vmem [shape: bf16[16,32], index: 0, kind: input, shape index: {}]   ;;  %s234_s1 = inlined_call_operand.vmem [shape: bf16[32,60], index: 1, kind: input, shape index: {}]   ;;  %s235_s2 = inlined_call_operand.vmem [shape: f32[1,60], index: 2, kind: input, shape index: {}]   ;;  %s236_s3 = inlined_call_operand.hbm [shape: f32[16,60], index: 3, kind: output, shape index: {}]  }
   0x1   :  { %v151_v0 = vld [vmem:[%s234_s1] sm:$0xff]   ;;  %138 = vmatprep.subr.bf16.mxu0 %v178_v1  ;;  %v152_v2 = vld [vmem:[%s234_s1 + $0x8] sm:$0xff]   ;;  %142 = vmatprep.mubr.msk.bf16.mxu0 %vm179_vm0, %v178_v1 }
   0x2   :  { %139 = vmatpush3.bf16.msra.mxu0 %v151_v0 }
   0x3   :  { %140 = vmatprep.subr.bf16.mxu0 %v178_v1 }
   0x4   :  { %8 = vsyncpa [#allocation4], 0  ;;  %21 = vst.msk [vmem:[#allocation2] sm:$0xff] %vm20_vm1, %v178_v1  ;;  %v153_v3 = vld [vmem:[%s233_s0] sm:$0xff]   ;;  %vm48_vm2 = vcmask 261120   ;;  %s180_s0 = smov [#allocation3]  }
   0x5   :  { %22 = vst.msk [vmem:[#allocation2 + $0x8] sm:$0xff] %vm20_vm1, %v178_v1  ;;  %v134_v12 = vld [vmem:[%s235_s2] ss:$0 sm:$0xff]  ;;  %s119_s19 = sshll.u32 %s180_s0, 4  ;;  %s120_s19 = int_to_ptr.vmem [resolvable:$true] %s119_s19 }
   0x6   :  { %141 = vmatpush3.bf16.msra.mxu0 %v152_v2  ;;  %s154_s20 = scalar_lea.vmem %s120_s19, 256  ;;  %p159_p1 = scmp.lt.s32.totalorder %s120_s19, %s120_s19 }
   0x7   :  { %p155_p0 = scmp.ne.s32.totalorder %s120_s19, %s154_s20  ;;  %p160_p2 = scmp.lt.s32.totalorder %s154_s20, %s154_s20 }
   0x9   :  { %143 = vmatmul.mubr.msk.bf16.vlgmr.msra.gmra.mrb[0].mxu0 %vm48_vm2, %v153_v3  ;;  %p161_p3 = por %p160_p2, %p159_p1 }
   0xb   :  { %v23_v4 = vld [vmem:[#allocation2] sm:$0xff]  ;;  %p162_p4 = pnand %p161_p3, %p155_p0 }
   0xc   :  { %v24_v6 = vld [vmem:[#allocation2 + $0x8] sm:$0xff] }
  0xdc   :  { %v86_v5 = vpop.f32.mrb[0].mxu0 }
  0xdd   :  { %v93_v7 = vadd.f32 %v86_v5, %v23_v4  ;;  %v144_v8 = vpop.f32.mrb[1].mxu0 }
  0xde   :  { %v89_v9 = vpop.f32.mrb[2].mxu0 }
  0xdf   :  { %96 = vst.msk [vmem:[#allocation2] sm:$0xff] %vm20_vm1, %v93_v7  ;;  %v94_v10 = vadd.f32 %v89_v9, %v24_v6  ;;  %v145_v11 = vpop.f32.mrb[3].mxu0 }
  0xe1   :  { %97 = vst.msk [vmem:[#allocation2 + $0x8] sm:$0xff] %vm20_vm1, %v94_v10 }
  0xe6   :  { %v101_v13 = vld [vmem:[#allocation2] sm:$0xff] }
  0xe7   :  { %v110_v14 = vadd.f32 %v134_v12, %v101_v13 }
  0xe8   :  { %v102_v15 = vld [vmem:[#allocation2 + $0x8] sm:$0xff] }
  0xe9   :  { %v111_v16 = vadd.f32 %v134_v12, %v102_v15  ;;  %112 = vst.msk [vmem:[#allocation3] sm:$0xff] %vm20_vm1, %v110_v14 }
  0xeb   :  { %113 = vst.msk [vmem:[#allocation3 + $0x8] sm:$0xff] %vm20_vm1, %v111_v16 }
  0xec   :  { %165 = shalt.err (!%p162_p4)
}
  0xed   :  { %s166_s22 = scalar_lea.hbm %s236_s3, 256 }
  0xee   :  { %p167_p5 = scmp.ne.s32.totalorder %s236_s3, %s166_s22  ;;  %p170_p6 = scmp.lt.u32.totalorder %s166_s22, %s236_s3 }
  0xf0   :  { %p172_p7 = pnand %p170_p6, %p167_p5 }
  0xf2   :  { %175 = shalt.err (!%p172_p7)
}
  0xf3   :  { %s181_s27 = smov 128   ;;  %s182_s28 = smov 8  }
  0xf4   :  { %125 = dma.vmem_to_hbm [thread:$0]  %s120_s19, 256, %s236_s3, [#allocation4], %s181_s27, %s181_s27, %s182_s28  }
  0xf5   :  { %176 = dma.done.wait [#allocation4], 256  }
  0xf6   :  { %177 = vsyncadd [#allocation4], 4294967040 }
  0xf7   :  { %129 = vsyncpa [#allocation4], 1 }

</bundles_post_ra>
